<compile_context>
chip_gen: v6e
topology: v6e:2x2x1
jax: 0.10.0
libtpu: 0.0.40
codegen_flags: <defaults>
</compile_context>

<pallas_src>
import jax
import jax.numpy as jnp
from jax.experimental import pallas as pl
from jax.experimental.pallas import tpu as pltpu

IMG_SHAPE = 28 * 28   # 784
H1 = 256
H2 = 128
OUT = 1
DEFAULT_TB = 2048     # batch tile for large batches; sweep {1024, 2048}


def _discriminator_kernel(x_ref, w1_ref, b1_ref, w2_ref, b2_ref,
                          w3_ref, b3_ref, o_ref):
    # In-kernel bf16 cast of the raw f32 input tile (no wrapper-side copy).
    x = x_ref[...].astype(jnp.bfloat16)                          # (tb, 784)

    # Layer 1: Linear(784 -> 256); bf16 MXU matmul, f32 accumulation.
    h = jnp.dot(x, w1_ref[...],
                preferred_element_type=jnp.float32) + b1_ref[...]
    h = jnp.maximum(h, 0.2 * h)                                  # LeakyReLU(0.2)

    # Layer 2: Linear(256 -> 128)
    h = jnp.dot(h.astype(jnp.bfloat16), w2_ref[...],
                preferred_element_type=jnp.float32) + b2_ref[...]
    h = jnp.maximum(h, 0.2 * h)                                  # (tb, 128) f32

    # Layer 3: Linear(128 -> 1), lane-dense.  (8,128) x (tb,128)^T -> (8,tb);
    # row 0 of w3_ref holds the real weights, rows 1..7 are zeros, so every
    # MXU operand is tile-native and the output slab is (1, tb) (unmasked vst).
    z8 = jax.lax.dot_general(
        w3_ref[...], h.astype(jnp.bfloat16),
        dimension_numbers=(((1,), (1,)), ((), ())),
        preferred_element_type=jnp.float32)                      # (8, tb)
    z = z8[0:1, :] + b3_ref[...]                                 # (1, tb)

    # Numerically stable sigmoid; exp and approx reciprocal use the EUP slot.
    e = jnp.exp(-jnp.abs(z))
    r = pl.reciprocal(1.0 + e, approx=True)
    o_ref[...] = jnp.where(z >= 0, r, e * r)


def _choose_batch_tile(B, batch_tile):
    """Pick a batch tile (multiple of 128) and padded batch size."""
    b_pad = max(128, ((B + 127) // 128) * 128)        # batch rounded to 128
    tb = max(128, (min(batch_tile, b_pad) // 128) * 128)
    # Guarantee >= 2 grid steps when the batch allows it, so the "parallel"
    # grid axis can be sharded across both TensorCores on v7x.
    if b_pad >= 256:
        tb = min(tb, max(128, ((b_pad // 2) // 128) * 128))
    # Largest multiple of 128 <= tb that divides b_pad (clean grid, no re-pad).
    while b_pad % tb:
        tb -= 128
    return tb, b_pad


def discriminator_forward(x, params, *, batch_tile=DEFAULT_TB):
    """x: [B, 784] float32 -> validity: [B, 1] float32."""
    w1, b1, w2, b2, w3, b3 = params
    B = x.shape[0]
    tb, B_pad = _choose_batch_tile(B, batch_tile)

    # Raw f32 x goes straight into the kernel.  Batch pad only when needed
    # (typical GAN batch sizes hit the no-pad fast path).
    x_in = x if B_pad == B else jnp.pad(x, ((0, B_pad - B), (0, 0)))

    # Small, one-off layout prep for the (VMEM-resident) weights.
    w1_b = w1.astype(jnp.bfloat16)                               # (784, 256)
    w2_b = w2.astype(jnp.bfloat16)                               # (256, 128)
    w3_slab = jnp.zeros((8, H2), jnp.bfloat16).at[0].set(
        w3.reshape(H2).astype(jnp.bfloat16))                     # (8, 128)
    b1_2 = b1.reshape(1, H1)
    b2_2 = b2.reshape(1, H2)
    b3_2 = b3.reshape(1, OUT)

    grid = (B_pad // tb,)
    const = lambda shape: pl.BlockSpec(shape, lambda i: (0, 0))

    out = pl.pallas_call(
        _discriminator_kernel,
        out_shape=jax.ShapeDtypeStruct((1, B_pad), jnp.float32),
        grid=grid,
        in_specs=[
            pl.BlockSpec((tb, IMG_SHAPE), lambda i: (i, 0)),  # x tile (f32, pipelined)
            const((IMG_SHAPE, H1)),                           # w1 (resident)
            const((1, H1)),                                   # b1
            const((H1, H2)),                                  # w2
            const((1, H2)),                                   # b2
            const((8, H2)),                                   # w3 slab
            const((1, OUT)),                                  # b3
        ],
        out_specs=pl.BlockSpec((1, tb), lambda i: (0, i)),    # lane-dense output
        compiler_params=pltpu.CompilerParams(
            dimension_semantics=("parallel",),   # megacore sharding on v7x
            vmem_limit_bytes=32 << 20,           # fits tb=2048 double-buffered x
        ),
    )(x_in, w1_b, b1_2, w2_b, b2_2, w3_slab, b3_2)

    # (1, B_pad) -> (B, 1); reshape of a contiguous row is free.
    return out.reshape(B_pad, OUT)[:B]


def init_params(key):
    """Deterministic init mimicking nn.Linear default: U(-1/sqrt(fan_in), +)."""
    def linear(key, fan_in, fan_out):
        kw, kb = jax.random.split(key)
        bound = 1.0 / (fan_in ** 0.5)
        w = jax.random.uniform(kw, (fan_in, fan_out), jnp.float32, -bound, bound)
        b = jax.random.uniform(kb, (fan_out,), jnp.float32, -bound, bound)
        return w, b

    k1, k2, k3 = jax.random.split(key, 3)
    w1, b1 = linear(k1, IMG_SHAPE, H1)
    w2, b2 = linear(k2, H1, H2)
    w3, b3 = linear(k3, H2, OUT)
    return (w1, b1, w2, b2, w3, b3)


def reference_forward(x, params):
    """Pure-JAX reference using the same bf16-matmul / f32-accumulate recipe
    for layers 1-2 (layer 3 + sigmoid kept in f32).  Note: this (and the
    kernel) deviates from a pure-f32 PyTorch forward by ~1e-2 rel on the
    pre-sigmoid logit; sigmoid outputs agree to well within 5e-3."""
    w1, b1, w2, b2, w3, b3 = params
    h = jnp.dot(x.astype(jnp.bfloat16), w1.astype(jnp.bfloat16),
                preferred_element_type=jnp.float32) + b1
    h = jnp.where(h > 0, h, 0.2 * h)
    h = jnp.dot(h.astype(jnp.bfloat16), w2.astype(jnp.bfloat16),
                preferred_element_type=jnp.float32) + b2
    h = jnp.where(h > 0, h, 0.2 * h)
    z = h @ w3 + b3
    return jax.nn.sigmoid(z)


if __name__ == "__main__":
    key = jax.random.PRNGKey(0)
    k_params, k1, k2, k3 = jax.random.split(key, 4)
    params = init_params(k_params)

    # Test 1: tiny batch (single grid step, batch-padding path).
    x_small = jax.random.normal(k1, (8, IMG_SHAPE), jnp.float32)
    out_small = jax.block_until_ready(discriminator_forward(x_small, params))
    ref_small = reference_forward(x_small, params)
    assert out_small.shape == (8, 1), out_small.shape
    assert jnp.allclose(out_small, ref_small, atol=5e-3, rtol=5e-3), \
        f"max abs diff {jnp.max(jnp.abs(out_small - ref_small))}"

    # Test 2: batch splitting into >= 2 grid steps with no padding (fast path).
    x_mid = jax.random.normal(k2, (256, IMG_SHAPE), jnp.float32)
    out_mid = jax.block_until_ready(discriminator_forward(x_mid, params))
    ref_mid = reference_forward(x_mid, params)
    assert out_mid.shape == (256, 1), out_mid.shape
    assert jnp.allclose(out_mid, ref_mid, atol=5e-3, rtol=5e-3), \
        f"max abs diff {jnp.max(jnp.abs(out_mid - ref_mid))}"

    # Test 3: batch not a multiple of the tile (padding + multi-step grid).
    x_odd = jax.random.normal(k3, (300, IMG_SHAPE), jnp.float32)
    out_odd = jax.block_until_ready(discriminator_forward(x_odd, params))
    ref_odd = reference_forward(x_odd, params)
    assert out_odd.shape == (300, 1), out_odd.shape
    assert jnp.allclose(out_odd, ref_odd, atol=5e-3, rtol=5e-3), \
        f"max abs diff {jnp.max(jnp.abs(out_odd - ref_odd))}"

    print("KERNEL_OK")
</pallas_src>

<mosaic_0001>
module attributes {stable_mosaic.version = 11 : i64} {
  func.func @_discriminator_kernel(%arg0: i32, %arg1: memref<128x784xf32, #tpu.memory_space<vmem>>, %arg2: memref<784x256xbf16, #tpu.memory_space<vmem>>, %arg3: memref<1x256xf32, #tpu.memory_space<vmem>>, %arg4: memref<256x128xbf16, #tpu.memory_space<vmem>>, %arg5: memref<1x128xf32, #tpu.memory_space<vmem>>, %arg6: memref<8x128xbf16, #tpu.memory_space<vmem>>, %arg7: memref<1x1xf32, #tpu.memory_space<vmem>>, %arg8: memref<1x128xf32, #tpu.memory_space<vmem>>) attributes {dimension_semantics = [#tpu.dimension_semantics<parallel>], iteration_bounds = array<i64: 1>, scalar_prefetch = 0 : i64, scratch_operands = 0 : i64, tpu.core_type = #tpu.core_type<tc>, window_params = [{transform_indices = @transform_0, window_bounds = array<i64: 128, 784>}, {pipeline_mode = #tpu.pipeline_mode<synchronous>, transform_indices = @transform_1, window_bounds = array<i64: 784, 256>}, {pipeline_mode = #tpu.pipeline_mode<synchronous>, transform_indices = @transform_2, window_bounds = array<i64: 1, 256>}, {pipeline_mode = #tpu.pipeline_mode<synchronous>, transform_indices = @transform_3, window_bounds = array<i64: 256, 128>}, {pipeline_mode = #tpu.pipeline_mode<synchronous>, transform_indices = @transform_4, window_bounds = array<i64: 1, 128>}, {pipeline_mode = #tpu.pipeline_mode<synchronous>, transform_indices = @transform_5, window_bounds = array<i64: 8, 128>}, {pipeline_mode = #tpu.pipeline_mode<synchronous>, transform_indices = @transform_6, window_bounds = array<i64: 1, 1>}, {transform_indices = @transform_7, window_bounds = array<i64: 1, 128>}]} {
    %c0 = arith.constant 0 : index
    %c0_0 = arith.constant 0 : index
    %0 = vector.load %arg1[%c0, %c0_0] : memref<128x784xf32, #tpu.memory_space<vmem>>, vector<128x784xf32>
    %1 = arith.truncf %0 : vector<128x784xf32> to vector<128x784xbf16>
    %c0_1 = arith.constant 0 : index
    %c0_2 = arith.constant 0 : index
    %2 = vector.load %arg2[%c0_1, %c0_2] : memref<784x256xbf16, #tpu.memory_space<vmem>>, vector<784x256xbf16>
    %cst = arith.constant dense<0.000000e+00> : vector<128x256xf32>
    %3 = tpu.matmul %1, %2, %cst {dimension_numbers = #tpu.dot_dimension_numbers<[1], [0], [0], [1], [0, 0, 1, 1], [], []>} : vector<128x784xbf16>, vector<784x256xbf16>, vector<128x256xf32> -> vector<128x256xf32>
    %c0_3 = arith.constant 0 : index
    %c0_4 = arith.constant 0 : index
    %4 = vector.load %arg3[%c0_3, %c0_4] : memref<1x256xf32, #tpu.memory_space<vmem>>, vector<1x256xf32>
    %5 = vector.broadcast %4 : vector<1x256xf32> to vector<128x256xf32>
    %6 = arith.addf %3, %5 : vector<128x256xf32>
    %cst_5 = arith.constant 2.000000e-01 : f32
    %7 = vector.broadcast %cst_5 : f32 to vector<128x256xf32>
    %8 = arith.mulf %7, %6 : vector<128x256xf32>
    %9 = arith.maximumf %6, %8 : vector<128x256xf32>
    %10 = arith.truncf %9 : vector<128x256xf32> to vector<128x256xbf16>
    %c0_6 = arith.constant 0 : index
    %c0_7 = arith.constant 0 : index
    %11 = vector.load %arg4[%c0_6, %c0_7] : memref<256x128xbf16, #tpu.memory_space<vmem>>, vector<256x128xbf16>
    %cst_8 = arith.constant dense<0.000000e+00> : vector<128x128xf32>
    %12 = tpu.matmul %10, %11, %cst_8 {dimension_numbers = #tpu.dot_dimension_numbers<[1], [0], [0], [1], [0, 0, 1, 1], [], []>} : vector<128x256xbf16>, vector<256x128xbf16>, vector<128x128xf32> -> vector<128x128xf32>
    %c0_9 = arith.constant 0 : index
    %c0_10 = arith.constant 0 : index
    %13 = vector.load %arg5[%c0_9, %c0_10] : memref<1x128xf32, #tpu.memory_space<vmem>>, vector<1x128xf32>
    %14 = vector.broadcast %13 : vector<1x128xf32> to vector<128x128xf32>
    %15 = arith.addf %12, %14 : vector<128x128xf32>
    %cst_11 = arith.constant 2.000000e-01 : f32
    %16 = vector.broadcast %cst_11 : f32 to vector<128x128xf32>
    %17 = arith.mulf %16, %15 : vector<128x128xf32>
    %18 = arith.maximumf %15, %17 : vector<128x128xf32>
    %c0_12 = arith.constant 0 : index
    %c0_13 = arith.constant 0 : index
    %19 = vector.load %arg6[%c0_12, %c0_13] : memref<8x128xbf16, #tpu.memory_space<vmem>>, vector<8x128xbf16>
    %20 = arith.truncf %18 : vector<128x128xf32> to vector<128x128xbf16>
    %cst_14 = arith.constant dense<0.000000e+00> : vector<8x128xf32>
    %21 = tpu.matmul %19, %20, %cst_14 {dimension_numbers = #tpu.dot_dimension_numbers<[1], [1], [0], [0], [0, 0, 1, 0], [], []>} : vector<8x128xbf16>, vector<128x128xbf16>, vector<8x128xf32> -> vector<8x128xf32>
    %22 = vector.extract_strided_slice %21 {offsets = [0, 0], sizes = [1, 128], strides = [1, 1]} : vector<8x128xf32> to vector<1x128xf32>
    %c0_15 = arith.constant 0 : index
    %c0_16 = arith.constant 0 : index
    %23 = vector.load %arg7[%c0_15, %c0_16] : memref<1x1xf32, #tpu.memory_space<vmem>>, vector<1x1xf32>
    %24 = vector.broadcast %23 : vector<1x1xf32> to vector<1x128xf32>
    %25 = arith.addf %22, %24 : vector<1x128xf32>
    %26 = math.absf %25 : vector<1x128xf32>
    %cst_17 = arith.constant 0.000000e+00 : f32
    %27 = vector.broadcast %cst_17 : f32 to vector<1x128xf32>
    %28 = arith.subf %27, %26 : vector<1x128xf32>
    %29 = math.exp %28 : vector<1x128xf32>
    %cst_18 = arith.constant 1.000000e+00 : f32
    %30 = vector.broadcast %cst_18 : f32 to vector<1x128xf32>
    %31 = arith.addf %30, %29 : vector<1x128xf32>
    %32 = tpu.reciprocal %31 {approx = true} : vector<1x128xf32> -> vector<1x128xf32>
    %cst_19 = arith.constant 0.000000e+00 : f32
    %33 = vector.broadcast %cst_19 : f32 to vector<1x128xf32>
    %34 = arith.cmpf oge, %25, %33 : vector<1x128xf32>
    %35 = arith.mulf %29, %32 : vector<1x128xf32>
    %36 = arith.select %34, %32, %35 : vector<1x128xi1>, vector<1x128xf32>
    %c0_20 = arith.constant 0 : index
    %c0_21 = arith.constant 0 : index
    %37 = vector.load %arg8[%c0_20, %c0_21] : memref<1x128xf32, #tpu.memory_space<vmem>>, vector<1x128xf32>
    tpu.vector_store %arg8[%c0_20, %c0_21], %36 {strides = array<i32>} : memref<1x128xf32, #tpu.memory_space<vmem>>, vector<1x128xf32>,
    return
  }
  func.func @transform_0(%arg0: i32) -> (i32, i32) {
    %c0_i32 = arith.constant 0 : i32
    %c0_i32_0 = arith.constant 0 : i32
    return %arg0, %c0_i32 : i32, i32
  }
  func.func @transform_1(%arg0: i32) -> (i32, i32) {
    %c0_i32 = arith.constant 0 : i32
    %c0_i32_0 = arith.constant 0 : i32
    %c0_i32_1 = arith.constant 0 : i32
    return %c0_i32, %c0_i32_0 : i32, i32
  }
  func.func @transform_2(%arg0: i32) -> (i32, i32) {
    %c0_i32 = arith.constant 0 : i32
    %c0_i32_0 = arith.constant 0 : i32
    %c0_i32_1 = arith.constant 0 : i32
    return %c0_i32, %c0_i32_0 : i32, i32
  }
  func.func @transform_3(%arg0: i32) -> (i32, i32) {
    %c0_i32 = arith.constant 0 : i32
    %c0_i32_0 = arith.constant 0 : i32
    %c0_i32_1 = arith.constant 0 : i32
    return %c0_i32, %c0_i32_0 : i32, i32
  }
  func.func @transform_4(%arg0: i32) -> (i32, i32) {
    %c0_i32 = arith.constant 0 : i32
    %c0_i32_0 = arith.constant 0 : i32
    %c0_i32_1 = arith.constant 0 : i32
    return %c0_i32, %c0_i32_0 : i32, i32
  }
  func.func @transform_5(%arg0: i32) -> (i32, i32) {
    %c0_i32 = arith.constant 0 : i32
    %c0_i32_0 = arith.constant 0 : i32
    %c0_i32_1 = arith.constant 0 : i32
    return %c0_i32, %c0_i32_0 : i32, i32
  }
  func.func @transform_6(%arg0: i32) -> (i32, i32) {
    %c0_i32 = arith.constant 0 : i32
    %c0_i32_0 = arith.constant 0 : i32
    %c0_i32_1 = arith.constant 0 : i32
    return %c0_i32, %c0_i32_0 : i32, i32
  }
  func.func @transform_7(%arg0: i32) -> (i32, i32) {
    %c0_i32 = arith.constant 0 : i32
    %c0_i32_0 = arith.constant 0 : i32
    return %c0_i32, %arg0 : i32, i32
  }
}

</mosaic_0001>

<bundles_post_ra>
// kernel: tpu_custom_call.1
= control target key start
LH: loop header
LB: loop body
LE: loop exit
PB: predicated region body
PF: predicated region fallthrough
CT: control target
= control target key end

     0   :  { %s3123_s0 = inlined_call_operand.vmem [shape: f32[128,784], index: 0, kind: input, shape index: {}]   ;;  %s3124_s1 = inlined_call_operand.vmem [shape: bf16[784,256], index: 1, kind: input, shape index: {}]   ;;  %s3125_s2 = inlined_call_operand.vmem [shape: f32[1,256], index: 2, kind: input, shape index: {}]   ;;  %s3126_s3 = inlined_call_operand.vmem [shape: bf16[256,128], index: 3, kind: input, shape index: {}]   ;;  %s3127_s4 = inlined_call_operand.vmem [shape: f32[1,128], index: 4, kind: input, shape index: {}]   ;;  %s3128_s5 = inlined_call_operand.vmem [shape: bf16[8,128], index: 5, kind: input, shape index: {}]   ;;  %s3129_s6 = inlined_call_operand.<no memory space> [shape: f32[1,1], index: 6, kind: input, shape index: {}]   ;;  %s3130_s7 = inlined_call_operand.hbm [shape: f32[1,128], index: 7, kind: output, shape index: {}]  }
   0x1   :  { %v12_v0 = vstv %s3129_s6 }
   0x2   :  { %13 = vst [vmem:[#allocation2] sm:$0x1] %v12_v0 }
   0x3   :  { %v1956_v1 = vld [vmem:[%s3124_s1 + $0x74] ss:$8 sps:$4 sm:$0xff]   ;;  %v1960_v3 = vld [vmem:[%s3124_s1 + $0x70] ss:$8 sps:$4 sm:$0xff]   ;;  %v1962_v5 = vld [vmem:[%s3124_s1 + $0x64] ss:$8 sps:$4 sm:$0xff]  }
   0x4   :  { %v1958_v2 = vld [vmem:[%s3124_s1 + $0x174] ss:$8 sps:$4 sm:$0xff]   ;;  %823 = vmatprep.subr.bf16.mxu0 %v1956_v1  ;;  %v1961_v4 = vld [vmem:[%s3124_s1 + $0x170] ss:$8 sps:$4 sm:$0xff]   ;;  %v1964_v6 = vld [vmem:[%s3124_s1 + $0x164] ss:$8 sps:$4 sm:$0xff]  }
   0x5   :  { %936 = vmatprep.subr.bf16.mxu1 %v1958_v2  ;;  %824 = vmatpush1.bf16.msra.mxu0 %v1960_v3  ;;  %v1966_v7 = vld [vmem:[%s3124_s1 + $0x60] ss:$8 sps:$4 sm:$0xff]   ;;  %v1968_v9 = vld [vmem:[%s3124_s1 + $0x54] ss:$8 sps:$4 sm:$0xff]   ;;  %v1972_v11 = vld [vmem:[%s3124_s1 + $0x50] ss:$8 sps:$4 sm:$0xff]  }
   0x6   :  { %937 = vmatpush1.bf16.msra.mxu1 %v1961_v4  ;;  %825 = vmatprep.subr.bf16.mxu0 %v1962_v5  ;;  %v1967_v8 = vld [vmem:[%s3124_s1 + $0x160] ss:$8 sps:$4 sm:$0xff]   ;;  %v1970_v10 = vld [vmem:[%s3124_s1 + $0x154] ss:$8 sps:$4 sm:$0xff]   ;;  %v1973_v12 = vld [vmem:[%s3124_s1 + $0x150] ss:$8 sps:$4 sm:$0xff]  }
   0x7   :  { %938 = vmatprep.subr.bf16.mxu1 %v1964_v6  ;;  %v1974_v13 = vld [vmem:[%s3124_s1 + $0x44] ss:$8 sps:$4 sm:$0xff]   ;;  %v1978_v15 = vld [vmem:[%s3124_s1 + $0x40] ss:$8 sps:$4 sm:$0xff]   ;;  %v1980_v17 = vld [vmem:[%s3124_s1 + $0x34] ss:$8 sps:$4 sm:$0xff]  }
   0x8   :  { %v1976_v14 = vld [vmem:[%s3124_s1 + $0x144] ss:$8 sps:$4 sm:$0xff]   ;;  %v1979_v16 = vld [vmem:[%s3124_s1 + $0x140] ss:$8 sps:$4 sm:$0xff]   ;;  %v1982_v18 = vld [vmem:[%s3124_s1 + $0x134] ss:$8 sps:$4 sm:$0xff]  }
   0x9   :  { %826 = vmatpush1.bf16.msra.mxu0 %v1966_v7  ;;  %v1984_v19 = vld [vmem:[%s3124_s1 + $0x30] ss:$8 sps:$4 sm:$0xff]   ;;  %v1986_v21 = vld [vmem:[%s3124_s1 + $0x24] ss:$8 sps:$4 sm:$0xff]   ;;  %v1990_v23 = vld [vmem:[%s3124_s1 + $0x20] ss:$8 sps:$4 sm:$0xff]  }
   0xa   :  { %939 = vmatpush1.bf16.msra.mxu1 %v1967_v8  ;;  %827 = vmatprep.subr.bf16.mxu0 %v1968_v9  ;;  %v1985_v20 = vld [vmem:[%s3124_s1 + $0x130] ss:$8 sps:$4 sm:$0xff]   ;;  %v1988_v22 = vld [vmem:[%s3124_s1 + $0x124] ss:$8 sps:$4 sm:$0xff]   ;;  %v1991_v24 = vld [vmem:[%s3124_s1 + $0x120] ss:$8 sps:$4 sm:$0xff]  }
   0xb   :  { %940 = vmatprep.subr.bf16.mxu1 %v1970_v10  ;;  %v1992_v25 = vld [vmem:[%s3124_s1 + $0x14] ss:$8 sps:$4 sm:$0xff]   ;;  %v1996_v27 = vld [vmem:[%s3124_s1 + $0x10] ss:$8 sps:$4 sm:$0xff]   ;;  %v1998_v29 = vld [vmem:[%s3124_s1 + $0x4] ss:$8 sps:$4 sm:$0xff]  }
   0xc   :  { %v1994_v26 = vld [vmem:[%s3124_s1 + $0x114] ss:$8 sps:$4 sm:$0xff]   ;;  %v1997_v28 = vld [vmem:[%s3124_s1 + $0x110] ss:$8 sps:$4 sm:$0xff]   ;;  %v2000_v30 = vld [vmem:[%s3124_s1 + $0x104] ss:$8 sps:$4 sm:$0xff]  }
   0xd   :  { %828 = vmatpush1.bf16.msra.mxu0 %v1972_v11  ;;  %v2002_v31 = vld [vmem:[%s3124_s1] ss:$8 sps:$4 sm:$0xff]   ;;  %v2004_v33 = vld [vmem:[%s3124_s1 + $0xf4] ss:$8 sps:$4 sm:$0xff]   ;;  %v2145_v35 = vmov 0  }
   0xe   :  { %941 = vmatpush1.bf16.msra.mxu1 %v1973_v12  ;;  %829 = vmatprep.subr.bf16.mxu0 %v1974_v13  ;;  %v2003_v32 = vld [vmem:[%s3124_s1 + $0x100] ss:$8 sps:$4 sm:$0xff]   ;;  %v2006_v34 = vld [vmem:[%s3124_s1 + $0x1f4] ss:$8 sps:$4 sm:$0xff]   ;;  %v2008_v36 = vld [vmem:[%s3124_s1 + $0xf0] ss:$8 sps:$4 sm:$0xff]  }
   0xf   :  { %942 = vmatprep.subr.bf16.mxu1 %v1976_v14  ;;  %1955 = vset.pattern.permute.xlu0 %v2145_v35  ;;  %v2009_v37 = vld [vmem:[%s3124_s1 + $0x1f0] ss:$8 sps:$4 sm:$0xff]   ;;  %v2010_v38 = vld [vmem:[%s3124_s1 + $0xe4] ss:$8 sps:$4 sm:$0xff]   ;;  %v2014_v40 = vld [vmem:[%s3124_s1 + $0xe0] ss:$8 sps:$4 sm:$0xff]  }
  0x10   :  { %v2012_v39 = vld [vmem:[%s3124_s1 + $0x1e4] ss:$8 sps:$4 sm:$0xff]   ;;  %v2015_v41 = vld [vmem:[%s3124_s1 + $0x1e0] ss:$8 sps:$4 sm:$0xff]   ;;  %v2016_v42 = vld [vmem:[%s3124_s1 + $0xd4] ss:$8 sps:$4 sm:$0xff]  }
  0x11   :  { %830 = vmatpush1.bf16.msra.mxu0 %v1978_v15  ;;  %v2018_v43 = vld [vmem:[%s3124_s1 + $0x1d4] ss:$8 sps:$4 sm:$0xff]   ;;  %v2020_v44 = vld [vmem:[%s3124_s1 + $0xd0] ss:$8 sps:$4 sm:$0xff]   ;;  %v2022_v46 = vld [vmem:[%s3124_s1 + $0xc4] ss:$8 sps:$4 sm:$0xff]  }
  0x12   :  { %943 = vmatpush1.bf16.msra.mxu1 %v1979_v16  ;;  %831 = vmatprep.subr.bf16.mxu0 %v1980_v17  ;;  %v2021_v45 = vld [vmem:[%s3124_s1 + $0x1d0] ss:$8 sps:$4 sm:$0xff]   ;;  %v2024_v47 = vld [vmem:[%s3124_s1 + $0x1c4] ss:$8 sps:$4 sm:$0xff]   ;;  %v2026_v52 = vld [vmem:[%s3124_s1 + $0xc0] ss:$8 sps:$4 sm:$0xff]  }
  0x13   :  { %944 = vmatprep.subr.bf16.mxu1 %v1982_v18  ;;  %v31_v48 = vld [vmem:[%s3123_s0 + $0x8] sm:$0xff]  ;;  %v38_v49 = vld [vmem:[%s3123_s0 + $0x40] sm:$0xff]  ;;  %v33_v50 = vld [vmem:[%s3123_s0 + $0x18] sm:$0xff] }
  0x14   :  { %v40_v51 = vld [vmem:[%s3123_s0 + $0x50] sm:$0xff]  ;;  %v2027_v53 = vld [vmem:[%s3124_s1 + $0x1c0] ss:$8 sps:$4 sm:$0xff]   ;;  %v143_v55 = vpack.c.bf16 %v38_v49, %v31_v48  ;;  %v2034_v60 = vld [vmem:[%s3124_s1 + $0xa4] ss:$8 sps:$4 sm:$0xff]  }
  0x15   :  { %832 = vmatpush1.bf16.msra.mxu0 %v1984_v19  ;;  %v2028_v54 = vld [vmem:[%s3124_s1 + $0xb4] ss:$8 sps:$4 sm:$0xff]   ;;  %v145_v56 = vpack.c.bf16 %v40_v51, %v33_v50  ;;  %v2032_v58 = vld [vmem:[%s3124_s1 + $0xb0] ss:$8 sps:$4 sm:$0xff]   ;;  %v2036_v61 = vld [vmem:[%s3124_s1 + $0x1a4] ss:$8 sps:$4 sm:$0xff]  }
  0x16   :  { %945 = vmatpush1.bf16.msra.mxu1 %v1985_v20  ;;  %833 = vmatprep.subr.bf16.mxu0 %v1986_v21  ;;  %v2030_v57 = vld [vmem:[%s3124_s1 + $0x1b4] ss:$8 sps:$4 sm:$0xff]   ;;  %v2033_v59 = vld [vmem:[%s3124_s1 + $0x1b0] ss:$8 sps:$4 sm:$0xff]   ;;  %v2038_v62 = vld [vmem:[%s3124_s1 + $0xa0] ss:$8 sps:$4 sm:$0xff]  }
  0x17   :  { %946 = vmatprep.subr.bf16.mxu1 %v1988_v22  ;;  %855 = vmatprep.mubr.bf16.mxu0 %v143_v55  ;;  %v2039_v63 = vld [vmem:[%s3124_s1 + $0x1a0] ss:$8 sps:$4 sm:$0xff]   ;;  %v2040_v0 = vld [vmem:[%s3124_s1 + $0x94] ss:$8 sps:$4 sm:$0xff]   ;;  %v2044_v2 = vld [vmem:[%s3124_s1 + $0x90] ss:$8 sps:$4 sm:$0xff]  }
  0x18   :  { %968 = vmatprep.mubr.bf16.mxu1 %v145_v56  ;;  %v2042_v1 = vld [vmem:[%s3124_s1 + $0x194] ss:$8 sps:$4 sm:$0xff]   ;;  %v2045_v3 = vld [vmem:[%s3124_s1 + $0x190] ss:$8 sps:$4 sm:$0xff]   ;;  %v2046_v4 = vld [vmem:[%s3124_s1 + $0x84] ss:$8 sps:$4 sm:$0xff]  }
  0x19   :  { %834 = vmatpush1.bf16.msra.mxu0 %v1990_v23  ;;  %v2048_v5 = vld [vmem:[%s3124_s1 + $0x184] ss:$8 sps:$4 sm:$0xff]   ;;  %v2050_v6 = vld [vmem:[%s3124_s1 + $0x80] ss:$8 sps:$4 sm:$0xff]   ;;  %v37_v9 = vld [vmem:[%s3123_s0 + $0x38] sm:$0xff] }
  0x1a   :  { %947 = vmatpush1.bf16.msra.mxu1 %v1991_v24  ;;  %835 = vmatprep.subr.bf16.mxu0 %v1992_v25  ;;  %v2051_v7 = vld [vmem:[%s3124_s1 + $0x180] ss:$8 sps:$4 sm:$0xff]   ;;  %v32_v10 = vld [vmem:[%s3123_s0 + $0x10] sm:$0xff]  ;;  %v45_v13 = vld [vmem:[%s3123_s0 + $0x78] sm:$0xff] }
  0x1b   :  { %948 = vmatprep.subr.bf16.mxu1 %v1994_v26  ;;  %v30_v8 = vld [vmem:[%s3123_s0] sm:$0xff]  ;;  %v39_v11 = vld [vmem:[%s3123_s0 + $0x48] sm:$0xff]  ;;  %v2054_v12 = vld [vmem:[%s3124_s1 + $0x274] ss:$8 sps:$4 sm:$0xff]  }
  0x1c   :  { %v52_v14 = vld [vmem:[%s3123_s0 + $0xb0] sm:$0xff]  ;;  %v142_v15 = vpack.c.bf16 %v37_v9, %v30_v8  ;;  %v144_v16 = vpack.c.bf16 %v39_v11, %v32_v10  ;;  %v47_v17 = vld [vmem:[%s3123_s0 + $0x88] sm:$0xff]  ;;  %v54_v18 = vld [vmem:[%s3123_s0 + $0xc0] sm:$0xff] }
  0x1d   :  { %836 = vmatpush1.bf16.msra.mxu0 %v1996_v27  ;;  %v2052_v19 = vld [vmem:[%s3124_s1 + $0x270] ss:$8 sps:$4 sm:$0xff]   ;;  %v2057_v20 = vld [vmem:[%s3124_s1 + $0x264] ss:$8 sps:$4 sm:$0xff]   ;;  %v2055_v21 = vld [vmem:[%s3124_s1 + $0x260] ss:$8 sps:$4 sm:$0xff]   ;;  %v150_v22 = vpack.c.bf16 %v52_v14, %v45_v13  ;;  %v152_v23 = vpack.c.bf16 %v54_v18, %v47_v17 }
  0x1e   :  { %949 = vmatpush1.bf16.msra.mxu1 %v1997_v28  ;;  %837 = vmatprep.subr.bf16.mxu0 %v1998_v29  ;;  %v44_v24 = vld [vmem:[%s3123_s0 + $0x70] sm:$0xff]  ;;  %v51_v25 = vld [vmem:[%s3123_s0 + $0xa8] sm:$0xff]  ;;  %v46_v26 = vld [vmem:[%s3123_s0 + $0x80] sm:$0xff] }
  0x1f   :  { %950 = vmatprep.subr.bf16.mxu1 %v2000_v30  ;;  %v53_v27 = vld [vmem:[%s3123_s0 + $0xb8] sm:$0xff]  ;;  %v59_v29 = vld [vmem:[%s3123_s0 + $0xe8] sm:$0xff]  ;;  %v149_v30 = vpack.c.bf16 %v51_v25, %v44_v24  ;;  %v82_v51 = vld [vmem:[%s3123_s0 + $0x1a0] sm:$0xff] }
  0x20   :  { %v2060_v28 = vld [vmem:[%s3124_s1 + $0x254] ss:$8 sps:$4 sm:$0xff]   ;;  %v75_v50 = vld [vmem:[%s3123_s0 + $0x168] sm:$0xff]  ;;  %v86_v9 = vld [vmem:[%s3123_s0 + $0x1c0] sm:$0xff] }
  0x21   :  { %838 = vmatpush1.bf16.msra.mxu0 %v2002_v31  ;;  %v151_v31 = vpack.c.bf16 %v53_v27, %v46_v26  ;;  %v166_v56 = vpack.c.bf16 %v82_v51, %v75_v50  ;;  %v2073_v8 = vld [vmem:[%s3124_s1 + $0x200] ss:$8 sps:$4 sm:$0xff]   ;;  %v93_v10 = vld [vmem:[%s3123_s0 + $0x1f8] sm:$0xff]  ;;  %v88_v11 = vld [vmem:[%s3123_s0 + $0x1d0] sm:$0xff] }
  0x22   :  { %951 = vmatpush1.bf16.msra.mxu1 %v2003_v32  ;;  %839 = vmatprep.subr.bf16.mxu0 %v2004_v33  ;;  %v66_v32 = vld [vmem:[%s3123_s0 + $0x120] sm:$0xff]  ;;  %v61_v33 = vld [vmem:[%s3123_s0 + $0xf8] sm:$0xff]  ;;  %v108_v17 = vld [vmem:[%s3123_s0 + $0x270] sm:$0xff] }
  0x23   :  { %952 = vmatprep.subr.bf16.mxu1 %v2006_v34  ;;  %v68_v34 = vld [vmem:[%s3123_s0 + $0x130] sm:$0xff]  ;;  %v101_v14 = vld [vmem:[%s3123_s0 + $0x238] sm:$0xff]  ;;  %v103_v18 = vld [vmem:[%s3123_s0 + $0x248] sm:$0xff] }
  0x24   :  { %v2078_v13 = vld [vmem:[%s3124_s1 + $0x2f4] ss:$8 sps:$4 sm:$0xff]   ;;  %v2079_v24 = vld [vmem:[%s3124_s1 + $0x2e0] ss:$8 sps:$4 sm:$0xff]   ;;  %v2088_v51 = vld [vmem:[%s3124_s1 + $0x2b0] ss:$8 sps:$4 sm:$0xff]  }
  0x25   :  { %840 = vmatpush2.bf16.msra.mxu0 %v2008_v36  ;;  %v2058_v36 = vld [vmem:[%s3124_s1 + $0x250] ss:$8 sps:$4 sm:$0xff]   ;;  %v107_v26 = vld [vmem:[%s3123_s0 + $0x268] sm:$0xff]  ;;  %v102_v27 = vld [vmem:[%s3123_s0 + $0x240] sm:$0xff] }
  0x26   :  { %953 = vmatpush2.bf16.msra.mxu1 %v2009_v37  ;;  %841 = vmatprep.subr.bf16.mxu0 %v2010_v38  ;;  %v2063_v37 = vld [vmem:[%s3124_s1 + $0x244] ss:$8 sps:$4 sm:$0xff]   ;;  %v157_v38 = vpack.c.bf16 %v66_v32, %v59_v29  ;;  %v100_v25 = vld [vmem:[%s3123_s0 + $0x230] sm:$0xff] }
  0x27   :  { %954 = vmatprep.subr.bf16.mxu1 %v2012_v39  ;;  %v159_v39 = vpack.c.bf16 %v68_v34, %v61_v33  ;;  %v2084_v29 = vld [vmem:[%s3124_s1 + $0x2d4] ss:$8 sps:$4 sm:$0xff]   ;;  %v122_v32 = vld [vmem:[%s3123_s0 + $0x2e0] sm:$0xff] }
  0x28   :  { %v117_v33 = vld [vmem:[%s3123_s0 + $0x2b8] sm:$0xff]  ;;  %v124_v34 = vld [vmem:[%s3123_s0 + $0x2f0] sm:$0xff]  ;;  %v138_v50 = vld [vmem:[%s3123_s0 + $0x360] sm:$0xff] }
  0x29   :  { %842 = vmatpush2.bf16.msra.mxu0 %v2014_v40  ;;  %v2061_v40 = vld [vmem:[%s3124_s1 + $0x240] ss:$8 sps:$4 sm:$0xff]  }
  0x2a   :  { %955 = vmatpush2.bf16.msra.mxu1 %v2015_v41  ;;  %843 = vmatprep.subr.bf16.mxu0 %v2016_v42  ;;  %v58_v41 = vld [vmem:[%s3123_s0 + $0xe0] sm:$0xff]  ;;  %v65_v42 = vld [vmem:[%s3123_s0 + $0x118] sm:$0xff] }
  0x2b   :  { %956 = vmatprep.subr.bf16.mxu1 %v2018_v43  ;;  %v60_v43 = vld [vmem:[%s3123_s0 + $0xf0] sm:$0xff]  ;;  %v156_v48 = vpack.c.bf16 %v65_v42, %v58_v41  ;;  %v187_v41 = vpack.c.bf16 %v124_v34, %v117_v33  ;;  %v114_v42 = vld [vmem:[%s3123_s0 + $0x2a0] sm:$0xff] }
  0x2d   :  { %844 = vmatpush2.bf16.msra.mxu0 %v2020_v44  ;;  %v67_v44 = vld [vmem:[%s3123_s0 + $0x128] sm:$0xff] }
  0x2e   :  { %957 = vmatpush2.bf16.msra.mxu1 %v2021_v45  ;;  %845 = vmatprep.subr.bf16.mxu0 %v2022_v46  ;;  %v2066_v45 = vld [vmem:[%s3124_s1 + $0x234] ss:$8 sps:$4 sm:$0xff]   ;;  %v158_v49 = vpack.c.bf16 %v67_v44, %v60_v43 }
  0x2f   :  { %958 = vmatprep.subr.bf16.mxu1 %v2024_v47  ;;  %v73_v46 = vld [vmem:[%s3123_s0 + $0x158] sm:$0xff]  ;;  %v80_v47 = vld [vmem:[%s3123_s0 + $0x190] sm:$0xff] }
  0x30   :  { %v164_v55 = vpack.c.bf16 %v80_v47, %v73_v46  ;;  %v121_v43 = vld [vmem:[%s3123_s0 + $0x2d8] sm:$0xff]  ;;  %v116_v44 = vld [vmem:[%s3123_s0 + $0x2b0] sm:$0xff] }
  0x31   :  { %846 = vmatpush2.bf16.msra.mxu0 %v2026_v52  ;;  %v2064_v52 = vld [vmem:[%s3124_s1 + $0x230] ss:$8 sps:$4 sm:$0xff]   ;;  %v2090_v46 = vld [vmem:[%s3124_s1 + $0x2b4] ss:$8 sps:$4 sm:$0xff]  }
  0x32   :  { %959 = vmatpush2.bf16.msra.mxu1 %v2027_v53  ;;  %847 = vmatprep.subr.bf16.mxu0 %v2028_v54  ;;  %v2069_v53 = vld [vmem:[%s3124_s1 + $0x224] ss:$8 sps:$4 sm:$0xff]   ;;  %v2067_v54 = vld [vmem:[%s3124_s1 + $0x220] ss:$8 sps:$4 sm:$0xff]   ;;  %v129_v47 = vld [vmem:[%s3123_s0 + $0x318] sm:$0xff] }
  0x33   :  { %960 = vmatprep.subr.bf16.mxu1 %v2030_v57  ;;  %v72_v57 = vld [vmem:[%s3123_s0 + $0x150] sm:$0xff] }
  0x35   :  { %848 = vmatpush2.bf16.msra.mxu0 %v2032_v58  ;;  %v79_v58 = vld [vmem:[%s3123_s0 + $0x188] sm:$0xff] }
  0x36   :  { %961 = vmatpush2.bf16.msra.mxu1 %v2033_v59  ;;  %849 = vmatprep.subr.bf16.mxu0 %v2034_v60  ;;  %v74_v59 = vld [vmem:[%s3123_s0 + $0x160] sm:$0xff]  ;;  %v81_v60 = vld [vmem:[%s3123_s0 + $0x198] sm:$0xff] }
  0x37   :  { %962 = vmatprep.subr.bf16.mxu1 %v2036_v61  ;;  %v2072_v61 = vld [vmem:[%s3124_s1 + $0x214] ss:$8 sps:$4 sm:$0xff]  }
  0x39   :  { %850 = vmatpush2.bf16.msra.mxu0 %v2038_v62  ;;  %v87_v62 = vld [vmem:[%s3123_s0 + $0x1c8] sm:$0xff] }
  0x3a   :  { %963 = vmatpush2.bf16.msra.mxu1 %v2039_v63  ;;  %851 = vmatprep.subr.bf16.mxu0 %v2040_v0  ;;  %v163_v63 = vpack.c.bf16 %v79_v58, %v72_v57  ;;  %v165_v0 = vpack.c.bf16 %v81_v60, %v74_v59 }
  0x3b   :  { %964 = vmatprep.subr.bf16.mxu1 %v2042_v1  ;;  %v94_v1 = vld [vmem:[%s3123_s0 + $0x200] sm:$0xff] }
  0x3d   :  { %852 = vmatpush2.bf16.msra.mxu0 %v2044_v2  ;;  %v89_v2 = vld [vmem:[%s3123_s0 + $0x1d8] sm:$0xff] }
  0x3e   :  { %965 = vmatpush2.bf16.msra.mxu1 %v2045_v3  ;;  %853 = vmatprep.subr.bf16.mxu0 %v2046_v4  ;;  %v96_v3 = vld [vmem:[%s3123_s0 + $0x210] sm:$0xff] }
  0x3f   :  { %966 = vmatprep.subr.bf16.mxu1 %v2048_v5  ;;  %v2070_v4 = vld [vmem:[%s3124_s1 + $0x210] ss:$8 sps:$4 sm:$0xff]   ;;  %v2075_v5 = vld [vmem:[%s3124_s1 + $0x204] ss:$8 sps:$4 sm:$0xff]  }
  0x41   :  { %854 = vmatpush2.bf16.msra.mxu0 %v2050_v6  ;;  %v171_v6 = vpack.c.bf16 %v94_v1, %v87_v62 }
  0x42   :  { %967 = vmatpush2.bf16.msra.mxu1 %v2051_v7  ;;  %1049 = vmatprep.subr.bf16.mxu0 %v2054_v12  ;;  %v173_v7 = vpack.c.bf16 %v96_v3, %v89_v2 }
  0x43   :  { %1919 = vmatprep.subr.bf16.mxu1 %v2054_v12  ;;  %v95_v12 = vld [vmem:[%s3123_s0 + $0x208] sm:$0xff] }
  0x44   :  { %856 = vmatmul.mubr.bf16.vlgmr.msra.gmra.mxu0 %v142_v15  ;;  %v170_v15 = vpack.c.bf16 %v93_v10, %v86_v9 }
  0x45   :  { %969 = vmatmul.mubr.bf16.vlgmr.msra.gmra.mxu1 %v144_v16  ;;  %1050 = vmatpush1.bf16.msra.mxu0 %v2052_v19  ;;  %v172_v16 = vpack.c.bf16 %v95_v12, %v88_v11 }
  0x46   :  { %1935 = vmatpush1.bf16.msra.mxu1 %v2052_v19  ;;  %1051 = vmatprep.subr.bf16.mxu0 %v2057_v20  ;;  %v110_v19 = vld [vmem:[%s3123_s0 + $0x280] sm:$0xff] }
  0x47   :  { %1920 = vmatprep.subr.bf16.mxu1 %v2057_v20  ;;  %865 = vmatprep.mubr.bf16.mxu0 %v150_v22  ;;  %v2076_v20 = vld [vmem:[%s3124_s1 + $0x2f0] ss:$8 sps:$4 sm:$0xff]   ;;  %v178_v22 = vpack.c.bf16 %v108_v17, %v101_v14 }
  0x48   :  { %978 = vmatprep.mubr.bf16.mxu1 %v152_v23  ;;  %v180_v23 = vpack.c.bf16 %v110_v19, %v103_v18 }
  0x49   :  { %1052 = vmatpush1.bf16.msra.mxu0 %v2055_v21 }
  0x4a   :  { %1936 = vmatpush1.bf16.msra.mxu1 %v2055_v21  ;;  %1053 = vmatprep.subr.bf16.mxu0 %v2060_v28  ;;  %v2081_v21 = vld [vmem:[%s3124_s1 + $0x2e4] ss:$8 sps:$4 sm:$0xff]  }
  0x4b   :  { %1921 = vmatprep.subr.bf16.mxu1 %v2060_v28  ;;  %v109_v28 = vld [vmem:[%s3123_s0 + $0x278] sm:$0xff] }
  0x4c   :  { %866 = vmatmul.mubr.bf16.gmra.mxu0 %v149_v30  ;;  %v115_v30 = vld [vmem:[%s3123_s0 + $0x2a8] sm:$0xff] }
  0x4d   :  { %979 = vmatmul.mubr.bf16.gmra.mxu1 %v151_v31  ;;  %1054 = vmatpush1.bf16.msra.mxu0 %v2058_v36  ;;  %v2082_v31 = vld [vmem:[%s3124_s1 + $0x2d0] ss:$8 sps:$4 sm:$0xff]  }
  0x4e   :  { %1937 = vmatpush1.bf16.msra.mxu1 %v2058_v36  ;;  %1055 = vmatprep.subr.bf16.mxu0 %v2063_v37  ;;  %v177_v36 = vpack.c.bf16 %v107_v26, %v100_v25 }
  0x4f   :  { %1922 = vmatprep.subr.bf16.mxu1 %v2063_v37  ;;  %875 = vmatprep.mubr.bf16.mxu0 %v157_v38  ;;  %v179_v37 = vpack.c.bf16 %v109_v28, %v102_v27  ;;  %v2087_v38 = vld [vmem:[%s3124_s1 + $0x2c4] ss:$8 sps:$4 sm:$0xff]  }
  0x50   :  { %988 = vmatprep.mubr.bf16.mxu1 %v159_v39  ;;  %v2085_v39 = vld [vmem:[%s3124_s1 + $0x2c0] ss:$8 sps:$4 sm:$0xff]  }
  0x51   :  { %1056 = vmatpush1.bf16.msra.mxu0 %v2061_v40 }
  0x52   :  { %1938 = vmatpush1.bf16.msra.mxu1 %v2061_v40  ;;  %1057 = vmatprep.subr.bf16.mxu0 %v2066_v45  ;;  %v185_v40 = vpack.c.bf16 %v122_v32, %v115_v30 }
  0x53   :  { %1923 = vmatprep.subr.bf16.mxu1 %v2066_v45  ;;  %v123_v45 = vld [vmem:[%s3123_s0 + $0x2e8] sm:$0xff] }
  0x54   :  { %876 = vmatmul.mubr.bf16.gmra.mxu0 %v156_v48  ;;  %v136_v48 = vld [vmem:[%s3123_s0 + $0x350] sm:$0xff] }
  0x55   :  { %989 = vmatmul.mubr.bf16.gmra.mxu1 %v158_v49  ;;  %1058 = vmatpush1.bf16.msra.mxu0 %v2064_v52  ;;  %v131_v49 = vld [vmem:[%s3123_s0 + $0x328] sm:$0xff] }
  0x56   :  { %1939 = vmatpush1.bf16.msra.mxu1 %v2064_v52  ;;  %1059 = vmatprep.subr.bf16.mxu0 %v2069_v53  ;;  %v184_v52 = vpack.c.bf16 %v121_v43, %v114_v42 }
  0x57   :  { %1924 = vmatprep.subr.bf16.mxu1 %v2069_v53  ;;  %885 = vmatprep.mubr.bf16.mxu0 %v164_v55  ;;  %v186_v53 = vpack.c.bf16 %v123_v45, %v116_v44 }
  0x58   :  { %998 = vmatprep.mubr.bf16.mxu1 %v166_v56 }
  0x59   :  { %1060 = vmatpush1.bf16.msra.mxu0 %v2067_v54 }
  0x5a   :  { %1940 = vmatpush1.bf16.msra.mxu1 %v2067_v54  ;;  %1061 = vmatprep.subr.bf16.mxu0 %v2072_v61  ;;  %v2093_v54 = vld [vmem:[%s3124_s1 + $0x2a4] ss:$8 sps:$4 sm:$0xff]  }
  0x5b   :  { %1925 = vmatprep.subr.bf16.mxu1 %v2072_v61 }
  0x5c   :  { %886 = vmatmul.mubr.bf16.gmra.mxu0 %v163_v63 }
  0x5d   :  { %999 = vmatmul.mubr.bf16.gmra.mxu1 %v165_v0  ;;  %1062 = vmatpush1.bf16.msra.mxu0 %v2070_v4 }
  0x5e   :  { %1941 = vmatpush1.bf16.msra.mxu1 %v2070_v4  ;;  %1063 = vmatprep.subr.bf16.mxu0 %v2075_v5 }
  0x5f   :  { %1926 = vmatprep.subr.bf16.mxu1 %v2075_v5  ;;  %895 = vmatprep.mubr.bf16.mxu0 %v171_v6 }
  0x60   :  { %1008 = vmatprep.mubr.bf16.mxu1 %v173_v7 }
  0x61   :  { %1064 = vmatpush1.bf16.msra.mxu0 %v2073_v8 }
  0x62   :  { %1942 = vmatpush1.bf16.msra.mxu1 %v2073_v8  ;;  %1065 = vmatprep.subr.bf16.mxu0 %v2078_v13 }
  0x63   :  { %1927 = vmatprep.subr.bf16.mxu1 %v2078_v13 }
  0x64   :  { %896 = vmatmul.mubr.bf16.gmra.mxu0 %v170_v15 }
  0x65   :  { %1009 = vmatmul.mubr.bf16.gmra.mxu1 %v172_v16  ;;  %1066 = vmatpush2.bf16.msra.mxu0 %v2076_v20 }
  0x66   :  { %1943 = vmatpush2.bf16.msra.mxu1 %v2076_v20  ;;  %1067 = vmatprep.subr.bf16.mxu0 %v2081_v21 }
  0x67   :  { %1928 = vmatprep.subr.bf16.mxu1 %v2081_v21  ;;  %905 = vmatprep.mubr.bf16.mxu0 %v178_v22 }
  0x68   :  { %1018 = vmatprep.mubr.bf16.mxu1 %v180_v23 }
  0x69   :  { %1068 = vmatpush2.bf16.msra.mxu0 %v2079_v24 }
  0x6a   :  { %1944 = vmatpush2.bf16.msra.mxu1 %v2079_v24  ;;  %1069 = vmatprep.subr.bf16.mxu0 %v2084_v29 }
  0x6b   :  { %1929 = vmatprep.subr.bf16.mxu1 %v2084_v29 }
  0x6c   :  { %906 = vmatmul.mubr.bf16.gmra.mxu0 %v177_v36 }
  0x6d   :  { %1019 = vmatmul.mubr.bf16.gmra.mxu1 %v179_v37  ;;  %1070 = vmatpush2.bf16.msra.mxu0 %v2082_v31 }
  0x6e   :  { %1945 = vmatpush2.bf16.msra.mxu1 %v2082_v31  ;;  %1071 = vmatprep.subr.bf16.mxu0 %v2087_v38 }
  0x6f   :  { %1930 = vmatprep.subr.bf16.mxu1 %v2087_v38  ;;  %915 = vmatprep.mubr.bf16.mxu0 %v185_v40 }
  0x70   :  { %1028 = vmatprep.mubr.bf16.mxu1 %v187_v41 }
  0x71   :  { %1072 = vmatpush2.bf16.msra.mxu0 %v2085_v39 }
  0x72   :  { %1946 = vmatpush2.bf16.msra.mxu1 %v2085_v39  ;;  %1073 = vmatprep.subr.bf16.mxu0 %v2090_v46 }
  0x73   :  { %1931 = vmatprep.subr.bf16.mxu1 %v2090_v46 }
  0x74   :  { %14 = vsyncpa [#allocation4], 0  ;;  %v192_v55 = vpack.c.bf16 %v136_v48, %v129_v47  ;;  %v194_v56 = vpack.c.bf16 %v138_v50, %v131_v49  ;;  %916 = vmatmul.mubr.bf16.gmra.mxu0 %v184_v52  ;;  %v2091_v57 = vld [vmem:[%s3124_s1 + $0x2a0] ss:$8 sps:$4 sm:$0xff]   ;;  %v128_v58 = vld [vmem:[%s3123_s0 + $0x310] sm:$0xff]  ;;  %vm798_vm0 = vcmask 130048  }
  0x75   :  { %1029 = vmatmul.mubr.bf16.gmra.mxu1 %v186_v53  ;;  %1074 = vmatpush2.bf16.msra.mxu0 %v2088_v51  ;;  %v135_v59 = vld [vmem:[%s3123_s0 + $0x348] sm:$0xff]  ;;  %v130_v60 = vld [vmem:[%s3123_s0 + $0x320] sm:$0xff]  ;;  %v137_v61 = vld [vmem:[%s3123_s0 + $0x358] sm:$0xff]  ;;  %vm2147_vm1 = vmmov 0  }
  0x76   :  { %1947 = vmatpush2.bf16.msra.mxu1 %v2088_v51  ;;  %1075 = vmatprep.subr.bf16.mxu0 %v2093_v54  ;;  %v2096_v62 = vld [vmem:[%s3124_s1 + $0x294] ss:$8 sps:$4 sm:$0xff]   ;;  %v35_v63 = vld [vmem:[%s3123_s0 + $0x28] sm:$0xff]  ;;  %v191_v0 = vpack.c.bf16 %v135_v59, %v128_v58  ;;  %v193_v1 = vpack.c.bf16 %v137_v61, %v130_v60  ;;  %v42_v2 = vld [vmem:[%s3123_s0 + $0x60] sm:$0xff] }
  0x77   :  { %1932 = vmatprep.subr.bf16.mxu1 %v2093_v54  ;;  %925 = vmatprep.mubr.bf16.mxu0 %v192_v55  ;;  %v91_v3 = vld [vmem:[%s3123_s0 + $0x1e8] sm:$0xff]  ;;  %v98_v4 = vld [vmem:[%s3123_s0 + $0x220] sm:$0xff]  ;;  %v2094_v5 = vld [vmem:[%s3124_s1 + $0x290] ss:$8 sps:$4 sm:$0xff]   ;;  %v147_v7 = vpack.c.bf16 %v42_v2, %v35_v63 }
  0x78   :  { %1038 = vmatprep.mubr.bf16.mxu1 %v194_v56  ;;  %v2099_v6 = vld [vmem:[%s3124_s1 + $0x284] ss:$8 sps:$4 sm:$0xff]   ;;  %v175_v8 = vpack.c.bf16 %v98_v4, %v91_v3  ;;  %v2097_v9 = vld [vmem:[%s3124_s1 + $0x280] ss:$8 sps:$4 sm:$0xff]   ;;  %v41_v11 = vld [vmem:[%s3123_s0 + $0x58] sm:$0xff] }
  0x79   :  { %1076 = vmatpush2.bf16.msra.mxu0 %v2091_v57  ;;  %v34_v10 = vld [vmem:[%s3123_s0 + $0x20] sm:$0xff]  ;;  %v97_v13 = vld [vmem:[%s3123_s0 + $0x218] sm:$0xff]  ;;  %v56_v16 = vld [vmem:[%s3123_s0 + $0xd0] sm:$0xff] }
  0x7a   :  { %1948 = vmatpush2.bf16.msra.mxu1 %v2091_v57  ;;  %1077 = vmatprep.subr.bf16.mxu0 %v2096_v62  ;;  %v90_v12 = vld [vmem:[%s3123_s0 + $0x1e0] sm:$0xff]  ;;  %v49_v15 = vld [vmem:[%s3123_s0 + $0x98] sm:$0xff]  ;;  %v112_v18 = vld [vmem:[%s3123_s0 + $0x290] sm:$0xff]  ;;  %v146_v19 = vpack.c.bf16 %v41_v11, %v34_v10 }
  0x7b   :  { %1933 = vmatprep.subr.bf16.mxu1 %v2096_v62  ;;  %v2102_v14 = vld [vmem:[%s3124_s1 + $0x304] ss:$8 sps:$4 sm:$0xff]   ;;  %v105_v17 = vld [vmem:[%s3123_s0 + $0x258] sm:$0xff]  ;;  %v174_v20 = vpack.c.bf16 %v97_v13, %v90_v12  ;;  %v2100_v21 = vld [vmem:[%s3124_s1 + $0x300] ss:$8 sps:$4 sm:$0xff]   ;;  %v154_v22 = vpack.c.bf16 %v56_v16, %v49_v15  ;;  %s2148_s1 = smov [#allocation3]  }
  0x7c   :  { %926 = vmatmul.mubr.bf16.gmra.mxu0 %v191_v0  ;;  %v182_v23 = vpack.c.bf16 %v112_v18, %v105_v17  ;;  %v48_v24 = vld [vmem:[%s3123_s0 + $0x90] sm:$0xff]  ;;  %v55_v25 = vld [vmem:[%s3123_s0 + $0xc8] sm:$0xff]  ;;  %v70_v29 = vld [vmem:[%s3123_s0 + $0x140] sm:$0xff]  ;;  %s1695_s20 = sshll.u32 %s2148_s1, 4  ;;  %s1696_s20 = int_to_ptr.vmem [resolvable:$true] %s1695_s20 }
  0x7d   :  { %1039 = vmatmul.mubr.bf16.gmra.mxu1 %v193_v1  ;;  %1078 = vmatpush2.bf16.msra.mxu0 %v2094_v5  ;;  %v104_v26 = vld [vmem:[%s3123_s0 + $0x250] sm:$0xff]  ;;  %v111_v27 = vld [vmem:[%s3123_s0 + $0x288] sm:$0xff]  ;;  %v126_v31 = vld [vmem:[%s3123_s0 + $0x300] sm:$0xff]  ;;  %v153_v32 = vpack.c.bf16 %v55_v25, %v48_v24  ;;  %s2127_s21 = scalar_lea.vmem %s1696_s20, 32  ;;  %p2128_p1 = scmp.lt.s32.totalorder %s1696_s20, %s1696_s20 }
  0x7e   :  { %1949 = vmatpush2.bf16.msra.mxu1 %v2094_v5  ;;  %1079 = vmatprep.subr.bf16.mxu0 %v2099_v6  ;;  %v63_v28 = vld [vmem:[%s3123_s0 + $0x108] sm:$0xff]  ;;  %v181_v33 = vpack.c.bf16 %v111_v27, %v104_v26  ;;  %v62_v37 = vld [vmem:[%s3123_s0 + $0x100] sm:$0xff]  ;;  %v69_v38 = vld [vmem:[%s3123_s0 + $0x138] sm:$0xff] }
  0x7f   :  { %1934 = vmatprep.subr.bf16.mxu1 %v2099_v6  ;;  %1081 = vmatprep.mubr.bf16.mxu0 %v147_v7  ;;  %v119_v30 = vld [vmem:[%s3123_s0 + $0x2c8] sm:$0xff]  ;;  %v161_v34 = vpack.c.bf16 %v70_v29, %v63_v28  ;;  %v118_v39 = vld [vmem:[%s3123_s0 + $0x2c0] sm:$0xff]  ;;  %v125_v40 = vld [vmem:[%s3123_s0 + $0x2f8] sm:$0xff]  ;;  %v160_v45 = vpack.c.bf16 %v69_v38, %v62_v37 }
  0x80   :  { %1121 = vmatprep.mubr.bf16.mxu1 %v175_v8  ;;  %v189_v36 = vpack.c.bf16 %v126_v31, %v119_v30  ;;  %v77_v41 = vld [vmem:[%s3123_s0 + $0x178] sm:$0xff]  ;;  %v84_v42 = vld [vmem:[%s3123_s0 + $0x1b0] sm:$0xff]  ;;  %v188_v46 = vpack.c.bf16 %v125_v40, %v118_v39  ;;  %v83_v50 = vld [vmem:[%s3123_s0 + $0x1a8] sm:$0xff]  ;;  %v298_v30 = vlaneseq }
  0x81   :  { %1080 = vmatpush2.bf16.msra.mxu0 %v2097_v9  ;;  %v133_v43 = vld [vmem:[%s3123_s0 + $0x338] sm:$0xff]  ;;  %v140_v44 = vld [vmem:[%s3123_s0 + $0x370] sm:$0xff]  ;;  %v168_v47 = vpack.c.bf16 %v84_v42, %v77_v41  ;;  %v139_v52 = vld [vmem:[%s3123_s0 + $0x368] sm:$0xff] }
  0x82   :  { %1950 = vmatpush2.bf16.msra.mxu1 %v2097_v9  ;;  %v196_v48 = vpack.c.bf16 %v140_v44, %v133_v43  ;;  %v76_v49 = vld [vmem:[%s3123_s0 + $0x170] sm:$0xff]  ;;  %v43_v56 = vld [vmem:[%s3123_s0 + $0x68] sm:$0xff]  ;;  %v50_v58 = vld [vmem:[%s3123_s0 + $0xa0] sm:$0xff]  ;;  %v2887_v31 = vshrl.u32 %v298_v30, 7 }
  0x83   :  { %1176 = vmatprep.subr.bf16.mxu1 %v2102_v14  ;;  %v132_v51 = vld [vmem:[%s3123_s0 + $0x330] sm:$0xff]  ;;  %v167_v53 = vpack.c.bf16 %v83_v50, %v76_v49  ;;  %v57_v59 = vld [vmem:[%s3123_s0 + $0xd8] sm:$0xff]  ;;  %v71_v62 = vld [vmem:[%s3123_s0 + $0x148] sm:$0xff] }
  0x84   :  { %1082 = vmatmul.mubr.bf16.vlgmr.msra.gmra.mxu0 %v146_v19  ;;  %v195_v54 = vpack.c.bf16 %v139_v52, %v132_v51  ;;  %v36_v55 = vld [vmem:[%s3123_s0 + $0x30] sm:$0xff]  ;;  %v155_v60 = vpack.c.bf16 %v57_v59, %v50_v58  ;;  %v78_v0 = vld [vmem:[%s3123_s0 + $0x180] sm:$0xff]  ;;  %v85_v1 = vld [vmem:[%s3123_s0 + $0x1b8] sm:$0xff]  ;;  %3133 = vst [vmem:[#allocation6_spill] sm:$0xff] %v2887_v31 }
  0x85   :  { %1122 = vmatmul.mubr.bf16.vlgmr.msra.gmra.mxu1 %v174_v20  ;;  %1091 = vmatprep.mubr.bf16.mxu0 %v154_v22  ;;  %v148_v57 = vpack.c.bf16 %v43_v56, %v36_v55  ;;  %v64_v61 = vld [vmem:[%s3123_s0 + $0x110] sm:$0xff]  ;;  %v169_v2 = vpack.c.bf16 %v85_v1, %v78_v0  ;;  %v99_v4 = vld [vmem:[%s3123_s0 + $0x228] sm:$0xff]  ;;  %v106_v6 = vld [vmem:[%s3123_s0 + $0x260] sm:$0xff] }
  0x86   :  { %1177 = vmatpush1.bf16.msra.mxu1 %v2100_v21  ;;  %1131 = vmatprep.mubr.bf16.mxu1 %v182_v23  ;;  %v162_v63 = vpack.c.bf16 %v71_v62, %v64_v61  ;;  %v92_v3 = vld [vmem:[%s3123_s0 + $0x1f0] sm:$0xff]  ;;  %v113_v7 = vld [vmem:[%s3123_s0 + $0x298] sm:$0xff]  ;;  %v127_v10 = vld [vmem:[%s3123_s0 + $0x308] sm:$0xff] }
  0x87   :  { %v176_v5 = vpack.c.bf16 %v99_v4, %v92_v3  ;;  %v183_v8 = vpack.c.bf16 %v113_v7, %v106_v6  ;;  %v120_v9 = vld [vmem:[%s3123_s0 + $0x2d0] sm:$0xff]  ;;  %v2103_v12 = vld [vmem:[%s3126_s3 + $0x78] sm:$0xff]   ;;  %v134_v14 = vld [vmem:[%s3123_s0 + $0x340] sm:$0xff] }
  0x88   :  { %v190_v11 = vpack.c.bf16 %v127_v10, %v120_v9  ;;  %v2104_v13 = vld [vmem:[%s3126_s3 + $0x38] sm:$0xff]   ;;  %1826 = vmatprep.subr.bf16.mxu0 %v2103_v12  ;;  %v2105_v16 = vld [vmem:[%s3126_s3 + $0x70] sm:$0xff]   ;;  %v2108_v19 = vld [vmem:[%s3126_s3 + $0x28] sm:$0xff]  }
  0x89   :  { %v141_v15 = vld [vmem:[%s3123_s0 + $0x378] sm:$0xff]  ;;  %1827 = vmatpush3.bf16.msra.mxu0 %v2104_v13  ;;  %v2106_v17 = vld [vmem:[%s3126_s3 + $0x30] sm:$0xff]   ;;  %v2109_v20 = vld [vmem:[%s3126_s3 + $0x60] sm:$0xff]  }
  0x8a   :  { %v197_v18 = vpack.c.bf16 %v141_v15, %v134_v14  ;;  %1828 = vmatprep.subr.bf16.mxu0 %v2105_v16  ;;  %v2110_v21 = vld [vmem:[%s3126_s3 + $0x20] sm:$0xff]   ;;  %v2111_v22 = vld [vmem:[%s3126_s3 + $0x58] sm:$0xff]   ;;  %v2113_v24 = vld [vmem:[%s3126_s3 + $0x50] sm:$0xff]  }
  0x8b   :  { %v2112_v23 = vld [vmem:[%s3126_s3 + $0x18] sm:$0xff]   ;;  %v2114_v25 = vld [vmem:[%s3126_s3 + $0x10] sm:$0xff]   ;;  %v2115_v26 = vld [vmem:[%s3126_s3 + $0x48] sm:$0xff]  }
  0x8c   :  { %1092 = vmatmul.mubr.bf16.gmra.mxu0 %v153_v32  ;;  %v2116_v27 = vld [vmem:[%s3126_s3 + $0x8] sm:$0xff]   ;;  %v2117_v28 = vld [vmem:[%s3126_s3 + $0x40] sm:$0xff]   ;;  %v3131_v32 = vsub.s32 0, %v2887_v31 }
  0x8d   :  { %1132 = vmatmul.mubr.bf16.gmra.mxu1 %v181_v33  ;;  %1101 = vmatprep.mubr.bf16.mxu0 %v161_v34  ;;  %v2118_v29 = vld [vmem:[%s3126_s3] sm:$0xff]   ;;  %v304_v34 = vsub.s32 1, %v2887_v31 }
  0x8e   :  { %1141 = vmatprep.mubr.bf16.mxu1 %v189_v36  ;;  %1829 = vmatpush3.bf16.msra.mxu0 %v2106_v17  ;;  %v296_v33 = vld [vmem:[%s3125_s2] sm:$0x3] }
  0x8f   :  { %v2896_v36 = vrot.slane %v296_v33, %v3131_v32  ;;  %v2898_v37 = vrot.slane %v296_v33, %v304_v34 }
  0x94   :  { %1102 = vmatmul.mubr.bf16.gmra.mxu0 %v160_v45 }
  0x95   :  { %1142 = vmatmul.mubr.bf16.gmra.mxu1 %v188_v46  ;;  %1111 = vmatprep.mubr.bf16.mxu0 %v168_v47 }
  0x96   :  { %1151 = vmatprep.mubr.bf16.mxu1 %v196_v48 }
  0x9c   :  { %1112 = vmatmul.mubr.bf16.gmra.mxu0 %v167_v53 }
  0x9d   :  { %1152 = vmatmul.mubr.bf16.gmra.mxu1 %v195_v54 }
  0x9e   :  { %1194 = vmatprep.mubr.bf16.mxu1 %v2145_v35 }
  0xa5   :  { %1801 = vmatmul.mubr.msk.bf16.vlgmr.msra.gmra.mxu1 %vm798_vm0, %v148_v57 }
  0xa6   :  { %1204 = vmatprep.mubr.bf16.mxu1 %v2145_v35 }
  0xad   :  { %1802 = vmatmul.mubr.msk.bf16.gmra.mxu1 %vm798_vm0, %v155_v60 }
  0xae   :  { %1214 = vmatprep.mubr.bf16.mxu1 %v2145_v35 }
  0xb5   :  { %1803 = vmatmul.mubr.msk.bf16.gmra.mxu1 %vm798_vm0, %v162_v63 }
  0xb6   :  { %1224 = vmatprep.mubr.bf16.mxu1 %v2145_v35 }
  0xbd   :  { %1804 = vmatmul.mubr.msk.bf16.gmra.mxu1 %vm798_vm0, %v169_v2 }
  0xbe   :  { %1234 = vmatprep.mubr.bf16.mxu1 %v2145_v35 }
  0xc5   :  { %1805 = vmatmul.mubr.msk.bf16.gmra.mxu1 %vm798_vm0, %v176_v5 }
  0xc6   :  { %1244 = vmatprep.mubr.bf16.mxu1 %v2145_v35 }
  0xcd   :  { %1806 = vmatmul.mubr.msk.bf16.gmra.mxu1 %vm798_vm0, %v183_v8 }
  0xce   :  { %1254 = vmatprep.mubr.bf16.mxu1 %v2145_v35 }
  0xd5   :  { %1807 = vmatmul.mubr.msk.bf16.gmra.mxu1 %vm798_vm0, %v190_v11 }
  0xd6   :  { %1264 = vmatprep.mubr.bf16.mxu1 %v2145_v35  ;;  %v2107_v35 = vld [vmem:[%s3126_s3 + $0x68] sm:$0xff]  }
  0xd7   :  { %1830 = vmatprep.subr.bf16.mxu0 %v2107_v35 }
  0xd8   :  { %1831 = vmatpush3.bf16.msra.mxu0 %v2108_v19 }
  0xd9   :  { %1832 = vmatprep.subr.bf16.mxu0 %v2109_v20 }
  0xdc   :  { %1833 = vmatpush3.bf16.msra.mxu0 %v2110_v21 }
  0xdd   :  { %1808 = vmatmul.mubr.msk.bf16.gmra.mxu1 %vm798_vm0, %v197_v18  ;;  %1834 = vmatprep.subr.bf16.mxu0 %v2111_v22 }
  0xe0   :  { %1835 = vmatpush3.bf16.msra.mxu0 %v2112_v23 }
  0xe1   :  { %1836 = vmatprep.subr.bf16.mxu0 %v2113_v24 }
  0xe4   :  { %1837 = vmatpush3.bf16.msra.mxu0 %v2114_v25 }
  0xe5   :  { %1838 = vmatprep.subr.bf16.mxu0 %v2115_v26 }
  0xe8   :  { %1839 = vmatpush3.bf16.msra.mxu0 %v2116_v27 }
  0xe9   :  { %1840 = vmatprep.subr.bf16.mxu0 %v2117_v28 }
  0xec   :  { %1841 = vmatpush3.bf16.msra.mxu0 %v2118_v29 }
 0x104   :  { %v857_v38 = vpop.f32.mrf.mxu0 }
 0x105   :  { %v970_v39 = vpop.f32.mrf.mxu1  ;;  %v858_v40 = vadd.f32 %v857_v38, %v2896_v36 }
 0x106   :  { %v859_v41 = vpop.f32.mrf.mxu0 }
 0x107   :  { %v972_v42 = vpop.f32.mrf.mxu1  ;;  %v2901_v43 = vadd.f32 %v970_v39, %v858_v40  ;;  %v860_v44 = vadd.f32 %v859_v41, %v2898_v37 }
 0x108   :  { %v2904_v45 = vpop.f32.mrf.mxu0 }
 0x109   :  { %v2906_v46 = vpop.f32.mrf.mxu1  ;;  %v2908_v47 = vadd.f32 %v972_v42, %v860_v44 }
 0x10a   :  { %v2910_v48 = vpop.f32.mrf.mxu0 }
 0x10b   :  { %v2912_v49 = vpop.f32.mrf.mxu1 }
 0x10c   :  { %v867_v50 = vpop.f32.mrf.mxu0 }
 0x10d   :  { %v980_v51 = vpop.f32.mrf.mxu1  ;;  %v868_v52 = vadd.f32 %v867_v50, %v2896_v36 }
 0x10e   :  { %v869_v53 = vpop.f32.mrf.mxu0 }
 0x10f   :  { %v982_v54 = vpop.f32.mrf.mxu1  ;;  %v2915_v55 = vadd.f32 %v980_v51, %v868_v52  ;;  %v870_v56 = vadd.f32 %v869_v53, %v2898_v37 }
 0x110   :  { %v2918_v57 = vpop.f32.mrf.mxu0 }
 0x111   :  { %v2920_v58 = vpop.f32.mrf.mxu1  ;;  %v2922_v59 = vadd.f32 %v982_v54, %v870_v56 }
 0x112   :  { %v2924_v60 = vpop.f32.mrf.mxu0 }
 0x113   :  { %v2926_v61 = vpop.f32.mrf.mxu1 }
 0x114   :  { %v877_v62 = vpop.f32.mrf.mxu0 }
 0x115   :  { %v990_v63 = vpop.f32.mrf.mxu1  ;;  %v878_v0 = vadd.f32 %v877_v62, %v2896_v36 }
 0x116   :  { %v879_v1 = vpop.f32.mrf.mxu0 }
 0x117   :  { %v992_v2 = vpop.f32.mrf.mxu1  ;;  %v2929_v3 = vadd.f32 %v990_v63, %v878_v0  ;;  %v880_v4 = vadd.f32 %v879_v1, %v2898_v37 }
 0x118   :  { %v2932_v5 = vpop.f32.mrf.mxu0 }
 0x119   :  { %v2934_v6 = vpop.f32.mrf.mxu1  ;;  %v2936_v7 = vadd.f32 %v992_v2, %v880_v4 }
 0x11a   :  { %v2938_v8 = vpop.f32.mrf.mxu0 }
 0x11b   :  { %v2940_v9 = vpop.f32.mrf.mxu1 }
 0x11c   :  { %v887_v10 = vpop.f32.mrf.mxu0 }
 0x11d   :  { %v1000_v11 = vpop.f32.mrf.mxu1  ;;  %v888_v12 = vadd.f32 %v887_v10, %v2896_v36 }
 0x11e   :  { %v889_v13 = vpop.f32.mrf.mxu0 }
 0x11f   :  { %v1002_v14 = vpop.f32.mrf.mxu1  ;;  %v2943_v15 = vadd.f32 %v1000_v11, %v888_v12  ;;  %v890_v16 = vadd.f32 %v889_v13, %v2898_v37 }
 0x120   :  { %v2946_v17 = vpop.f32.mrf.mxu0 }
 0x121   :  { %v2948_v18 = vpop.f32.mrf.mxu1  ;;  %v2950_v35 = vadd.f32 %v1002_v14, %v890_v16 }
 0x122   :  { %v2952_v19 = vpop.f32.mrf.mxu0 }
 0x123   :  { %v2954_v20 = vpop.f32.mrf.mxu1 }
 0x124   :  { %v897_v21 = vpop.f32.mrf.mxu0 }
 0x125   :  { %v1010_v22 = vpop.f32.mrf.mxu1  ;;  %v898_v23 = vadd.f32 %v897_v21, %v2896_v36 }
 0x126   :  { %v899_v24 = vpop.f32.mrf.mxu0 }
 0x127   :  { %v1012_v25 = vpop.f32.mrf.mxu1  ;;  %v1011_v26 = vadd.f32 %v1010_v22, %v898_v23  ;;  %v900_v27 = vadd.f32 %v899_v24, %v2898_v37 }
 0x128   :  { %v901_v28 = vpop.f32.mrf.mxu0 }
 0x129   :  { %v1014_v29 = vpop.f32.mrf.mxu1  ;;  %v1013_v30 = vadd.f32 %v1012_v25, %v900_v27 }
 0x12a   :  { %v2958_v33 = vpop.f32.mrf.mxu0 }
 0x12b   :  { %v2960_v34 = vpop.f32.mrf.mxu1 }
 0x12c   :  { %v907_v38 = vpop.f32.mrf.mxu0 }
 0x12d   :  { %v1020_v39 = vpop.f32.mrf.mxu1  ;;  %v908_v40 = vadd.f32 %v907_v38, %v2896_v36 }
 0x12e   :  { %v909_v41 = vpop.f32.mrf.mxu0 }
 0x12f   :  { %v1022_v42 = vpop.f32.mrf.mxu1  ;;  %v1021_v44 = vadd.f32 %v1020_v39, %v908_v40  ;;  %v910_v50 = vadd.f32 %v909_v41, %v2898_v37 }
 0x130   :  { %v911_v51 = vpop.f32.mrf.mxu0 }
 0x131   :  { %v1024_v52 = vpop.f32.mrf.mxu1  ;;  %v1023_v53 = vadd.f32 %v1022_v42, %v910_v50 }
 0x132   :  { %v2964_v54 = vpop.f32.mrf.mxu0 }
 0x133   :  { %v2966_v56 = vpop.f32.mrf.mxu1 }
 0x134   :  { %3134 = vst [vmem:[#allocation7_spill] sm:$0xff] %v2966_v56  ;;  %v917_v62 = vpop.f32.mrf.mxu0 }
 0x135   :  { %v1030_v63 = vpop.f32.mrf.mxu1  ;;  %v918_v0 = vadd.f32 %v917_v62, %v2896_v36  ;;  %v902_v62 = vadd.f32 %v901_v28, %v2896_v36 }
 0x136   :  { %v919_v1 = vpop.f32.mrf.mxu0 }
 0x137   :  { %v1032_v2 = vpop.f32.mrf.mxu1  ;;  %v1031_v4 = vadd.f32 %v1030_v63, %v918_v0  ;;  %v920_v10 = vadd.f32 %v919_v1, %v2898_v37 }
 0x138   :  { %v921_v11 = vpop.f32.mrf.mxu0 }
 0x139   :  { %v1034_v12 = vpop.f32.mrf.mxu1  ;;  %v1033_v13 = vadd.f32 %v1032_v2, %v920_v10 }
 0x13a   :  { %v2970_v14 = vpop.f32.mrf.mxu0 }
 0x13b   :  { %3135 = vst [vmem:[#allocation8_spill] sm:$0xff] %v2970_v14  ;;  %v2972_v16 = vpop.f32.mrf.mxu1 }
 0x13c   :  { %3136 = vst [vmem:[#allocation9_spill] sm:$0xff] %v2972_v16  ;;  %v927_v21 = vpop.f32.mrf.mxu0 }
 0x13d   :  { %v1040_v22 = vpop.f32.mrf.mxu1  ;;  %v928_v23 = vadd.f32 %v927_v21, %v2896_v36  ;;  %v1015_v21 = vadd.f32 %v1014_v29, %v902_v62 }
 0x13e   :  { %v929_v24 = vpop.f32.mrf.mxu0 }
 0x13f   :  { %v1042_v25 = vpop.f32.mrf.mxu1  ;;  %v1041_v27 = vadd.f32 %v1040_v22, %v928_v23  ;;  %v930_v38 = vadd.f32 %v929_v24, %v2898_v37 }
 0x140   :  { %v931_v39 = vpop.f32.mrf.mxu0 }
 0x141   :  { %v1044_v40 = vpop.f32.mrf.mxu1  ;;  %v1043_v41 = vadd.f32 %v1042_v25, %v930_v38  ;;  %v912_v38 = vadd.f32 %v911_v51, %v2896_v36 }
 0x142   :  { %v2976_v42 = vpop.f32.mrf.mxu0 }
 0x143   :  { %3137 = vst [vmem:[#allocation10_spill] sm:$0xff] %v2976_v42  ;;  %v2978_v50 = vpop.f32.mrf.mxu1 }
 0x144   :  { %3138 = vst [vmem:[#allocation11_spill] sm:$0xff] %v2978_v50  ;;  %v1083_v63 = vpop.f32.mrf.mxu0 }
 0x145   :  { %v1123_v0 = vpop.f32.mrf.mxu1 }
 0x146   :  { %v2981_v1 = vadd.f32 %v1123_v0, %v1011_v26  ;;  %v1085_v2 = vpop.f32.mrf.mxu0  ;;  %v1025_v26 = vadd.f32 %v1024_v52, %v912_v38 }
 0x147   :  { %v1125_v10 = vpop.f32.mrf.mxu1 }
 0x148   :  { %v2983_v32 = vadd.f32 %v1125_v10, %v1013_v30  ;;  %v1087_v24 = vpop.f32.mrf.mxu0  ;;  %v922_v10 = vadd.f32 %v921_v11, %v2896_v36 }
 0x149   :  { %v1127_v22 = vpop.f32.mrf.mxu1 }
 0x14a   :  { %v2985_v23 = vadd.f32 %v1127_v22, %v1015_v21  ;;  %v1089_v28 = vpop.f32.mrf.mxu0 }
 0x14b   :  { %v2987_v25 = vpop.f32.mrf.mxu1 }
 0x14c   :  { %v1093_v30 = vpop.f32.mrf.mxu0 }
 0x14d   :  { %v1133_v31 = vpop.f32.mrf.mxu1 }
 0x14e   :  { %v2990_v50 = vadd.f32 %v1133_v31, %v1021_v44  ;;  %v1095_v51 = vpop.f32.mrf.mxu0  ;;  %v1035_v31 = vadd.f32 %v1034_v12, %v922_v10  ;;  %v862_v12 = vadd.f32 %v2904_v45, %v2896_v36 }
 0x14f   :  { %v1135_v42 = vpop.f32.mrf.mxu1 }
 0x150   :  { %v2992_v0 = vadd.f32 %v1135_v42, %v1023_v53  ;;  %v1097_v53 = vpop.f32.mrf.mxu0 }
 0x151   :  { %v1137_v16 = vpop.f32.mrf.mxu1 }
 0x152   :  { %v2994_v29 = vadd.f32 %v1137_v16, %v1025_v26  ;;  %v932_v16 = vadd.f32 %v931_v39, %v2896_v36  ;;  %v1099_v11 = vpop.f32.mrf.mxu0  ;;  %v864_v39 = vadd.f32 %v2910_v48, %v2898_v37 }
 0x153   :  { %v2996_v62 = vpop.f32.mrf.mxu1 }
 0x154   :  { %3139 = vst [vmem:[#allocation12_spill] sm:$0xff] %v2994_v29  ;;  %v977_v45 = vadd.f32 %v2912_v49, %v864_v39 }
 0x155   :  { %v1143_v21 = vpop.f32.mrf.mxu1 }
 0x156   :  { %v2999_v22 = vadd.f32 %v1143_v21, %v1031_v4  ;;  %v1045_v4 = vadd.f32 %v1044_v40, %v932_v16  ;;  %v1086_v40 = vadd.f32 %v1085_v2, %v2908_v47  ;;  %v1094_v47 = vadd.f32 %v1093_v30, %v2915_v55 }
 0x157   :  { %v1145_v14 = vpop.f32.mrf.mxu1 }
 0x158   :  { %3140 = vst [vmem:[#allocation13_spill] sm:$0xff] %v2999_v22  ;;  %v3001_v44 = vadd.f32 %v1145_v14, %v1033_v13 }
 0x159   :  { %v1147_v56 = vpop.f32.mrf.mxu1 }
 0x15a   :  { %v3003_v52 = vadd.f32 %v1147_v56, %v1035_v31  ;;  %v1103_v56 = vpop.f32.mrf.mxu0  ;;  %v975_v31 = vadd.f32 %v2906_v46, %v862_v12 }
 0x15b   :  { %v3005_v42 = vpop.f32.mrf.mxu1 }
 0x15d   :  { %v1153_v38 = vpop.f32.mrf.mxu1 }
 0x15e   :  { %v3008_v26 = vadd.f32 %v1153_v38, %v1041_v27  ;;  %v1084_v27 = vadd.f32 %v1083_v63, %v2901_v43  ;;  %v874_v43 = vadd.f32 %v2924_v60, %v2898_v37 }
 0x15f   :  { %v1155_v29 = vpop.f32.mrf.mxu1 }
 0x160   :  { %v3010_v21 = vadd.f32 %v1155_v29, %v1043_v41  ;;  %v1105_v29 = vpop.f32.mrf.mxu0 }
 0x161   :  { %v1157_v22 = vpop.f32.mrf.mxu1 }
 0x162   :  { %3141 = vst [vmem:[#allocation14_spill] sm:$0xff] %v3010_v21  ;;  %v3014_v13 = vadd.f32 %v1157_v22, %v1045_v4  ;;  %v1088_v22 = vadd.f32 %v1087_v24, %v975_v31  ;;  %v872_v4 = vadd.f32 %v2918_v57, %v2896_v36  ;;  %v1107_v46 = vpop.f32.mrf.mxu0  ;;  %v1096_v24 = vadd.f32 %v1095_v51, %v2922_v59 }
 0x163   :  { %v3016_v14 = vpop.f32.mrf.mxu1 }
 0x164   :  { %3142 = vst [vmem:[#allocation15_spill] sm:$0xff] %v3014_v13  ;;  %3143 = vst [vmem:[#allocation16_spill] sm:$0xff] %v3016_v14  ;;  %v1090_v14 = vadd.f32 %v1089_v28, %v977_v45  ;;  %v985_v49 = vadd.f32 %v2920_v58, %v872_v4  ;;  %v1109_v60 = vpop.f32.mrf.mxu0 }
 0x165   :  { %v1196_v10 = vpop.f32.mrf.mxu1 }
 0x166   :  { %v1197_v41 = vadd.f32 %v1196_v10, %v1084_v27 }
 0x167   :  { %v1198_v16 = vpop.f32.mrf.mxu1 }
 0x168   :  { %v1199_v38 = vadd.f32 %v1198_v16, %v1086_v40  ;;  %v1275_v48 = vmul.f32 0.2, %v1197_v41  ;;  %v1098_v40 = vadd.f32 %v1097_v53, %v985_v49  ;;  %v1104_v53 = vadd.f32 %v1103_v56, %v2929_v3 }
 0x169   :  { %v1200_v13 = vpop.f32.mrf.mxu1 }
 0x16a   :  { %v1201_v21 = vadd.f32 %v1200_v13, %v1088_v22  ;;  %v1276_v2 = vmul.f32 0.2, %v1199_v38  ;;  %v1307_v57 = vmax.f32 %v1197_v41, %v1275_v48  ;;  %v987_v13 = vadd.f32 %v2926_v61, %v874_v43  ;;  %v1113_v48 = vpop.f32.mrf.mxu0 }
 0x16b   :  { %v1202_v63 = vpop.f32.mrf.mxu1 }
 0x16c   :  { %v1277_v12 = vmul.f32 0.2, %v1201_v21  ;;  %v1203_v27 = vadd.f32 %v1202_v63, %v1090_v14  ;;  %v1308_v45 = vmax.f32 %v1199_v38, %v1276_v2  ;;  %v882_v14 = vadd.f32 %v2932_v5, %v2896_v36 }
 0x16d   :  { %v1206_v39 = vpop.f32.mrf.mxu1  ;;  %v1100_v4 = vadd.f32 %v1099_v11, %v987_v13  ;;  %v1106_v5 = vadd.f32 %v1105_v29, %v2936_v7 }
 0x16e   :  { %v1309_v10 = vmax.f32 %v1201_v21, %v1277_v12  ;;  %v1278_v28 = vmul.f32 0.2, %v1203_v27  ;;  %v1207_v31 = vadd.f32 %v1206_v39, %v1094_v47  ;;  %v884_v21 = vadd.f32 %v2938_v8, %v2898_v37  ;;  %v1115_v39 = vpop.f32.mrf.mxu0 }
 0x16f   :  { %v1208_v16 = vpop.f32.mrf.mxu1  ;;  %v995_v47 = vadd.f32 %v2934_v6, %v882_v14  ;;  %v892_v6 = vadd.f32 %v2946_v17, %v2896_v36  ;;  %v1116_v36 = vadd.f32 %v1115_v39, %v2950_v35 }
 0x170   :  { %v1339_v22 = vpack.c.bf16 %v1309_v10, %v1307_v57  ;;  %v1310_v55 = vmax.f32 %v1203_v27, %v1278_v28  ;;  %v1209_v30 = vadd.f32 %v1208_v16, %v1096_v24  ;;  %v1279_v59 = vmul.f32 0.2, %v1207_v31 }
 0x171   :  { %v1210_v58 = vpop.f32.mrf.mxu1  ;;  %v997_v8 = vadd.f32 %v2940_v9, %v884_v21  ;;  %v1108_v24 = vadd.f32 %v1107_v46, %v995_v47  ;;  %v894_v16 = vadd.f32 %v2952_v19, %v2898_v37  ;;  %v1114_v46 = vadd.f32 %v1113_v48, %v2943_v15 }
 0x172   :  { %v1211_v51 = vadd.f32 %v1210_v58, %v1098_v40  ;;  %v1340_v41 = vpack.c.bf16 %v1310_v55, %v1308_v45  ;;  %v1280_v43 = vmul.f32 0.2, %v1209_v30  ;;  %v1311_v11 = vmax.f32 %v1207_v31, %v1279_v59  ;;  %v1117_v45 = vpop.f32.mrf.mxu0 }
 0x173   :  { %v1212_v61 = vpop.f32.mrf.mxu1  ;;  %v1110_v7 = vadd.f32 %v1109_v60, %v997_v8  ;;  %v1005_v14 = vadd.f32 %v2948_v18, %v892_v6  ;;  %v1007_v19 = vadd.f32 %v2954_v20, %v894_v16  ;;  %v904_v47 = vadd.f32 %v2958_v33, %v2898_v37 }
 0x174   :  { %v1281_v38 = vmul.f32 0.2, %v1211_v51  ;;  %v1213_v63 = vadd.f32 %v1212_v61, %v1100_v4  ;;  %1522 = vmatprep.mubr.bf16.mxu0 %v1340_v41  ;;  %v1312_v3 = vmax.f32 %v1209_v30, %v1280_v43  ;;  %v1119_v41 = vpop.f32.mrf.mxu0 }
 0x175   :  { %v1216_v2 = vpop.f32.mrf.mxu1  ;;  %1523 = vmatmul.mubr.bf16.vlgmr.msra.gmra.mxu0 %v1339_v22  ;;  %v1017_v39 = vadd.f32 %v2960_v34, %v904_v47 }
 0x176   :  { %v1313_v12 = vmax.f32 %v1211_v51, %v1281_v38  ;;  %v1282_v27 = vmul.f32 0.2, %v1213_v63  ;;  %v1217_v49 = vadd.f32 %v1216_v2, %v1104_v53  ;;  %v1118_v51 = vadd.f32 %v1117_v45, %v1005_v14 }
 0x177   :  { %v1218_v57 = vpop.f32.mrf.mxu1  ;;  %v1120_v38 = vadd.f32 %v1119_v41, %v1007_v19  ;;  %v1130_v6 = vadd.f32 %v2987_v25, %v1017_v39  ;;  %v3144_v25 = vld [vmem:[#allocation7_spill] sm:$0xff] }
 0x178   :  { %v1314_v56 = vmax.f32 %v1213_v63, %v1282_v27  ;;  %v1219_v10 = vadd.f32 %v1218_v57, %v1106_v5  ;;  %v1341_v28 = vpack.c.bf16 %v1313_v12, %v1311_v11  ;;  %v1283_v29 = vmul.f32 0.2, %v1217_v49 }
 0x179   :  { %v1220_v13 = vpop.f32.mrf.mxu1 }
 0x17a   :  { %v1221_v40 = vadd.f32 %v1220_v13, %v1108_v24  ;;  %v1342_v31 = vpack.c.bf16 %v1314_v56, %v1312_v3  ;;  %v1284_v22 = vmul.f32 0.2, %v1219_v10  ;;  %v1315_v60 = vmax.f32 %v1217_v49, %v1283_v29 }
 0x17b   :  { %v1222_v9 = vpop.f32.mrf.mxu1 }
 0x17c   :  { %v1285_v55 = vmul.f32 0.2, %v1221_v40  ;;  %v1223_v30 = vadd.f32 %v1222_v9, %v1110_v7  ;;  %1530 = vmatprep.mubr.bf16.mxu0 %v1342_v31  ;;  %v1316_v15 = vmax.f32 %v1219_v10, %v1284_v22 }
 0x17d   :  { %v1226_v17 = vpop.f32.mrf.mxu1  ;;  %1531 = vmatmul.mubr.bf16.gmra.mxu0 %v1341_v28 }
 0x17e   :  { %v1317_v58 = vmax.f32 %v1221_v40, %v1285_v55  ;;  %v1286_v4 = vmul.f32 0.2, %v1223_v30  ;;  %v1227_v59 = vadd.f32 %v1226_v17, %v1114_v46  ;;  %v914_v40 = vadd.f32 %v2964_v54, %v2898_v37 }
 0x17f   :  { %v1228_v21 = vpop.f32.mrf.mxu1 }
 0x180   :  { %v1318_v48 = vmax.f32 %v1223_v30, %v1286_v4  ;;  %v1229_v61 = vadd.f32 %v1228_v21, %v1116_v36  ;;  %v1343_v53 = vpack.c.bf16 %v1317_v58, %v1315_v60  ;;  %v1287_v18 = vmul.f32 0.2, %v1227_v59  ;;  %v3145_v4 = vld [vmem:[#allocation12_spill] sm:$0xff] }
 0x181   :  { %v1230_v43 = vpop.f32.mrf.mxu1  ;;  %v1027_v55 = vadd.f32 %v3144_v25, %v914_v40 }
 0x182   :  { %v1231_v63 = vadd.f32 %v1230_v43, %v1118_v51  ;;  %v1344_v35 = vpack.c.bf16 %v1318_v48, %v1316_v15  ;;  %v1288_v2 = vmul.f32 0.2, %v1229_v61  ;;  %v1319_v27 = vmax.f32 %v1227_v59, %v1287_v18  ;;  %v3146_v51 = vld [vmem:[#allocation8_spill] sm:$0xff] }
 0x183   :  { %v1232_v5 = vpop.f32.mrf.mxu1  ;;  %v1140_v60 = vadd.f32 %v2996_v62, %v1027_v55  ;;  %v924_v41 = vadd.f32 %v3146_v51, %v2898_v37  ;;  %v3148_v62 = vld [vmem:[#allocation9_spill] sm:$0xff] }
 0x184   :  { %v1289_v11 = vmul.f32 0.2, %v1231_v63  ;;  %v1233_v12 = vadd.f32 %v1232_v5, %v1120_v38  ;;  %1538 = vmatprep.mubr.bf16.mxu0 %v1344_v35  ;;  %v1320_v3 = vmax.f32 %v1229_v61, %v1288_v2  ;;  %v3147_v38 = vld [vmem:[#allocation13_spill] sm:$0xff] }
 0x185   :  { %v1236_v20 = vpop.f32.mrf.mxu1  ;;  %1539 = vmatmul.mubr.bf16.gmra.mxu0 %v1343_v53 }
 0x186   :  { %v1321_v49 = vmax.f32 %v1231_v63, %v1289_v11  ;;  %v1290_v8 = vmul.f32 0.2, %v1233_v12  ;;  %v1237_v24 = vadd.f32 %v1236_v20, %v2981_v1  ;;  %v1037_v63 = vadd.f32 %v3148_v62, %v924_v41 }
 0x187   :  { %v1238_v57 = vpop.f32.mrf.mxu1 }
 0x188   :  { %v1322_v56 = vmax.f32 %v1233_v12, %v1290_v8  ;;  %v1239_v10 = vadd.f32 %v1238_v57, %v2983_v32  ;;  %v1345_v33 = vpack.c.bf16 %v1321_v49, %v1319_v27  ;;  %v1291_v13 = vmul.f32 0.2, %v1237_v24 }
 0x189   :  { %v1240_v28 = vpop.f32.mrf.mxu1  ;;  %v1150_v20 = vadd.f32 %v3005_v42, %v1037_v63  ;;  %v3150_v42 = vld [vmem:[#allocation11_spill] sm:$0xff] }
 0x18a   :  { %v1241_v7 = vadd.f32 %v1240_v28, %v2985_v23  ;;  %v1346_v29 = vpack.c.bf16 %v1322_v56, %v1320_v3  ;;  %v1292_v1 = vmul.f32 0.2, %v1239_v10  ;;  %v1323_v9 = vmax.f32 %v1237_v24, %v1291_v13  ;;  %v3149_v24 = vld [vmem:[#allocation10_spill] sm:$0xff] }
 0x18b   :  { %v1242_v31 = vpop.f32.mrf.mxu1  ;;  %v934_v39 = vadd.f32 %v3149_v24, %v2898_v37 }
 0x18c   :  { %v1293_v16 = vmul.f32 0.2, %v1241_v7  ;;  %v1243_v34 = vadd.f32 %v1242_v31, %v1130_v6  ;;  %1546 = vmatprep.mubr.bf16.mxu0 %v1346_v29  ;;  %v1324_v23 = vmax.f32 %v1239_v10, %v1292_v1  ;;  %v3151_v31 = vld [vmem:[#allocation14_spill] sm:$0xff] }
 0x18d   :  { %v1246_v45 = vpop.f32.mrf.mxu1  ;;  %1547 = vmatmul.mubr.bf16.gmra.mxu0 %v1345_v33 }
 0x18e   :  { %v1325_v32 = vmax.f32 %v1241_v7, %v1293_v16  ;;  %v1294_v46 = vmul.f32 0.2, %v1243_v34  ;;  %v1247_v22 = vadd.f32 %v1246_v45, %v2990_v50  ;;  %v1047_v7 = vadd.f32 %v3150_v42, %v934_v39 }
 0x18f   :  { %v1248_v30 = vpop.f32.mrf.mxu1 }
 0x190   :  { %v1326_v14 = vmax.f32 %v1243_v34, %v1294_v46  ;;  %v1249_v36 = vadd.f32 %v1248_v30, %v2992_v0  ;;  %v1347_v54 = vpack.c.bf16 %v1325_v32, %v1323_v9  ;;  %v1295_v58 = vmul.f32 0.2, %v1247_v22  ;;  %v3152_v34 = vld [vmem:[#allocation16_spill] sm:$0xff]  ;;  %v3153_v32 = vld [vmem:[#allocation15_spill] sm:$0xff] }
 0x191   :  { %v1250_v17 = vpop.f32.mrf.mxu1  ;;  %v1160_v45 = vadd.f32 %v3152_v34, %v1047_v7 }
 0x192   :  { %v1251_v59 = vadd.f32 %v1250_v17, %v3145_v4  ;;  %v1348_v19 = vpack.c.bf16 %v1326_v14, %v1324_v23  ;;  %v1296_v50 = vmul.f32 0.2, %v1249_v36  ;;  %v1327_v53 = vmax.f32 %v1247_v22, %v1295_v58 }
 0x193   :  { %v1252_v21 = vpop.f32.mrf.mxu1  ;;  %v2146_v4 = vmov 0.0  }
 0x194   :  { %v1297_v15 = vmul.f32 0.2, %v1251_v59  ;;  %v1253_v48 = vadd.f32 %v1252_v21, %v1140_v60  ;;  %1554 = vmatprep.mubr.bf16.mxu0 %v1348_v19  ;;  %v1328_v47 = vmax.f32 %v1249_v36, %v1296_v50  ;;  %1899 = vmatprep.subr.bf16.mxu1 %v2146_v4  ;;  %v3080_v19 = vld [vmem:[%s3127_s4] ss:$0 sm:$0xff] }
 0x195   :  { %v1256_v61 = vpop.f32.mrf.mxu1  ;;  %1555 = vmatmul.mubr.bf16.gmra.mxu0 %v1347_v54  ;;  %1915 = vmatprep.mubr.msk.bf16.mxu1 %vm2147_vm1, %v2146_v4 }
 0x196   :  { %v1329_v0 = vmax.f32 %v1251_v59, %v1297_v15  ;;  %v1298_v43 = vmul.f32 0.2, %v1253_v48  ;;  %v1257_v18 = vadd.f32 %v1256_v61, %v3147_v38 }
 0x197   :  { %v1258_v35 = vpop.f32.mrf.mxu1 }
 0x198   :  { %v1330_v5 = vmax.f32 %v1253_v48, %v1298_v43  ;;  %v1259_v2 = vadd.f32 %v1258_v35, %v3001_v44  ;;  %v1349_v11 = vpack.c.bf16 %v1329_v0, %v1327_v53  ;;  %v1299_v27 = vmul.f32 0.2, %v1257_v18  ;;  %v1668_v53 = vld [vmem:[#allocation2] sm:$0x1] }
 0x199   :  { %v1260_v12 = vpop.f32.mrf.mxu1  ;;  %1671 = vperm.xlu0 %1955, %v1668_v53  }
 0x19a   :  { %v1261_v49 = vadd.f32 %v1260_v12, %v3003_v52  ;;  %v1350_v8 = vpack.c.bf16 %v1330_v5, %v1328_v47  ;;  %v1300_v3 = vmul.f32 0.2, %v1259_v2  ;;  %v1331_v28 = vmax.f32 %v1257_v18, %v1299_v27 }
 0x19b   :  { %v1262_v57 = vpop.f32.mrf.mxu1 }
 0x19c   :  { %v1301_v56 = vmul.f32 0.2, %v1261_v49  ;;  %v1263_v10 = vadd.f32 %v1262_v57, %v1150_v20  ;;  %1562 = vmatprep.mubr.bf16.mxu0 %v1350_v8  ;;  %v1332_v52 = vmax.f32 %v1259_v2, %v1300_v3 }
 0x19d   :  { %v1266_v33 = vpop.f32.mrf.mxu1  ;;  %1563 = vmatmul.mubr.bf16.gmra.mxu0 %v1349_v11 }
 0x19e   :  { %v1333_v44 = vmax.f32 %v1261_v49, %v1301_v56  ;;  %v1302_v6 = vmul.f32 0.2, %v1263_v10  ;;  %v1267_v13 = vadd.f32 %v1266_v33, %v3008_v26 }
 0x19f   :  { %v1268_v29 = vpop.f32.mrf.mxu1 }
 0x1a0   :  { %v1334_v40 = vmax.f32 %v1263_v10, %v1302_v6  ;;  %v1269_v1 = vadd.f32 %v1268_v29, %v3151_v31  ;;  %v1351_v37 = vpack.c.bf16 %v1333_v44, %v1331_v28  ;;  %v1303_v9 = vmul.f32 0.2, %v1267_v13 }
 0x1a1   :  { %v1270_v16 = vpop.f32.mrf.mxu1 }
 0x1a2   :  { %v1271_v46 = vadd.f32 %v1270_v16, %v3153_v32  ;;  %v1352_v22 = vpack.c.bf16 %v1334_v40, %v1332_v52  ;;  %v1304_v55 = vmul.f32 0.2, %v1269_v1  ;;  %v1335_v26 = vmax.f32 %v1267_v13, %v1303_v9 }
 0x1a3   :  { %v1272_v25 = vpop.f32.mrf.mxu1 }
 0x1a4   :  { %v1305_v30 = vmul.f32 0.2, %v1271_v46  ;;  %v1273_v23 = vadd.f32 %v1272_v25, %v1160_v45  ;;  %1570 = vmatprep.mubr.bf16.mxu0 %v1352_v22  ;;  %v1336_v54 = vmax.f32 %v1269_v1, %v1304_v55 }
 0x1a5   :  { %1571 = vmatmul.mubr.bf16.gmra.mxu0 %v1351_v37 }
 0x1a6   :  { %v1337_v14 = vmax.f32 %v1271_v46, %v1305_v30  ;;  %v1306_v36 = vmul.f32 0.2, %v1273_v23 }
 0x1a8   :  { %v1338_v17 = vmax.f32 %v1273_v23, %v1306_v36  ;;  %v1353_v60 = vpack.c.bf16 %v1337_v14, %v1335_v26 }
 0x1aa   :  { %v1354_v58 = vpack.c.bf16 %v1338_v17, %v1336_v54 }
 0x1ac   :  { %1578 = vmatprep.mubr.bf16.mxu0 %v1354_v58 }
 0x1ad   :  { %1579 = vmatmul.mubr.bf16.gmra.mxu0 %v1353_v60 }
 0x235   :  { %v1842_v59 = vpop.f32.mrf.mxu0 }
 0x237   :  { %v1843_v51 = vpop.f32.mrf.mxu0 }
 0x238   :  { %v1844_v41 = vadd.f32 %v1843_v51, %v1842_v59 }
 0x239   :  { %v1845_v21 = vpop.f32.mrf.mxu0 }
 0x23a   :  { %v1525_v50 = vadd.f32 %v1844_v41, %v3080_v19 }
 0x23b   :  { %v1846_v15 = vpop.f32.mrf.mxu0 }
 0x23c   :  { %v1847_v48 = vadd.f32 %v1846_v15, %v1845_v21  ;;  %v1587_v0 = vmul.f32 0.2, %v1525_v50 }
 0x23d   :  { %v1848_v61 = vpop.f32.mrf.mxu0 }
 0x23e   :  { %v1528_v43 = vadd.f32 %v1847_v48, %v3080_v19  ;;  %v1603_v35 = vmax.f32 %v1525_v50, %v1587_v0 }
 0x23f   :  { %v1849_v38 = vpop.f32.mrf.mxu0 }
 0x240   :  { %v1588_v18 = vmul.f32 0.2, %v1528_v43  ;;  %v1850_v62 = vadd.f32 %v1849_v38, %v1848_v61 }
 0x241   :  { %v1851_v63 = vpop.f32.mrf.mxu0 }
 0x242   :  { %v1604_v47 = vmax.f32 %v1528_v43, %v1588_v18  ;;  %v1533_v5 = vadd.f32 %v1850_v62, %v3080_v19 }
 0x243   :  { %v1852_v2 = vpop.f32.mrf.mxu0 }
 0x244   :  { %v3086_v11 = vpack.c.bf16 %v1604_v47, %v1603_v35  ;;  %v1853_v12 = vadd.f32 %v1852_v2, %v1851_v63  ;;  %v1589_v27 = vmul.f32 0.2, %v1533_v5 }
 0x245   :  { %v1854_v20 = vpop.f32.mrf.mxu0 }
 0x246   :  { %v1536_v49 = vadd.f32 %v1853_v12, %v3080_v19  ;;  %v1605_v3 = vmax.f32 %v1533_v5, %v1589_v27 }
 0x247   :  { %v1855_v8 = vpop.f32.mrf.mxu0 }
 0x248   :  { %v1590_v24 = vmul.f32 0.2, %v1536_v49  ;;  %v1856_v39 = vadd.f32 %v1855_v8, %v1854_v20 }
 0x249   :  { %v1857_v57 = vpop.f32.mrf.mxu0 }
 0x24a   :  { %v1606_v56 = vmax.f32 %v1536_v49, %v1590_v24  ;;  %v1541_v10 = vadd.f32 %v1856_v39, %v3080_v19 }
 0x24b   :  { %v1858_v33 = vpop.f32.mrf.mxu0 }
 0x24c   :  { %v3090_v28 = vpack.c.bf16 %v1606_v56, %v1605_v3  ;;  %v1859_v44 = vadd.f32 %v1858_v33, %v1857_v57  ;;  %v1591_v13 = vmul.f32 0.2, %v1541_v10 }
 0x24d   :  { %v1860_v6 = vpop.f32.mrf.mxu0 }
 0x24e   :  { %v1544_v42 = vadd.f32 %v1859_v44, %v3080_v19  ;;  %v1607_v31 = vmax.f32 %v1541_v10, %v1591_v13 }
 0x24f   :  { %v1861_v7 = vpop.f32.mrf.mxu0 }
 0x250   :  { %v1592_v29 = vmul.f32 0.2, %v1544_v42  ;;  %v1862_v52 = vadd.f32 %v1861_v7, %v1860_v6 }
 0x251   :  { %v1863_v40 = vpop.f32.mrf.mxu0 }
 0x252   :  { %v1608_v1 = vmax.f32 %v1544_v42, %v1592_v29  ;;  %v1549_v37 = vadd.f32 %v1862_v52, %v3080_v19 }
 0x253   :  { %v1864_v16 = vpop.f32.mrf.mxu0 }
 0x254   :  { %v3094_v34 = vpack.c.bf16 %v1608_v1, %v1607_v31  ;;  %v1865_v45 = vadd.f32 %v1864_v16, %v1863_v40  ;;  %v1593_v32 = vmul.f32 0.2, %v1549_v37 }
 0x255   :  { %v1866_v9 = vpop.f32.mrf.mxu0 }
 0x256   :  { %v1552_v46 = vadd.f32 %v1865_v45, %v3080_v19  ;;  %v1609_v30 = vmax.f32 %v1549_v37, %v1593_v32  ;;  %v1672_v45 = vpop.permute.xlu0 %1671 }
 0x257   :  { %v1867_v22 = vpop.f32.mrf.mxu0 }
 0x258   :  { %v1594_v25 = vmul.f32 0.2, %v1552_v46  ;;  %v1868_v44 = vadd.f32 %v1867_v22, %v1866_v9  ;;  %v3154_v9 = vld [vmem:[#allocation6_spill] sm:$0xff] }
 0x259   :  { %v1869_v55 = vpop.f32.mrf.mxu0  ;;  %v3155_v32 = vsub.s32 0, %v3154_v9 }
 0x25a   :  { %v1610_v23 = vmax.f32 %v1552_v46, %v1594_v25  ;;  %v1557_v7 = vadd.f32 %v1868_v44, %v3080_v19 }
 0x25b   :  { %v1870_v26 = vpop.f32.mrf.mxu0  ;;  %v1677_v46 = vrot.slane %v1672_v45, %v3155_v32 }
 0x25c   :  { %v1623_v14 = vpack.c.bf16 %v1610_v23, %v1609_v30  ;;  %v1871_v56 = vadd.f32 %v1870_v26, %v1869_v55  ;;  %v1595_v31 = vmul.f32 0.2, %v1557_v7 }
 0x25d   :  { %v1872_v36 = vpop.f32.mrf.mxu0 }
 0x25e   :  { %v1560_v13 = vadd.f32 %v1871_v56, %v3080_v19  ;;  %v1611_v37 = vmax.f32 %v1557_v7, %v1595_v31 }
 0x25f   :  { %v1873_v54 = vpop.f32.mrf.mxu0 }
 0x260   :  { %v1874_v49 = vadd.f32 %v1873_v54, %v1872_v36  ;;  %v1596_v52 = vmul.f32 0.2, %v1560_v13 }
 0x261   :  { %v1875_v17 = vpop.f32.mrf.mxu0 }
 0x262   :  { %v1565_v57 = vadd.f32 %v1874_v49, %v3080_v19  ;;  %v1612_v1 = vmax.f32 %v1560_v13, %v1596_v52 }
 0x263   :  { %v1876_v60 = vpop.f32.mrf.mxu0 }
 0x264   :  { %v1877_v12 = vadd.f32 %v1876_v60, %v1875_v17  ;;  %v1597_v6 = vmul.f32 0.2, %v1565_v57  ;;  %v1624_v16 = vpack.c.bf16 %v1612_v1, %v1611_v37 }
 0x265   :  { %v1878_v58 = vpop.f32.mrf.mxu0 }
 0x266   :  { %v1568_v24 = vadd.f32 %v1877_v12, %v3080_v19  ;;  %v1613_v29 = vmax.f32 %v1565_v57, %v1597_v6 }
 0x267   :  { %v1879_v59 = vpop.f32.mrf.mxu0 }
 0x268   :  { %v1880_v38 = vadd.f32 %v1879_v59, %v1878_v58  ;;  %v1598_v10 = vmul.f32 0.2, %v1568_v24 }
 0x269   :  { %v1881_v51 = vpop.f32.mrf.mxu0 }
 0x26a   :  { %v1573_v47 = vadd.f32 %v1880_v38, %v3080_v19  ;;  %v1614_v42 = vmax.f32 %v1568_v24, %v1598_v10 }
 0x26b   :  { %v1882_v41 = vpop.f32.mrf.mxu0 }
 0x26c   :  { %v1883_v0 = vadd.f32 %v1882_v41, %v1881_v51  ;;  %v1599_v8 = vmul.f32 0.2, %v1573_v47  ;;  %v1625_v40 = vpack.c.bf16 %v1614_v42, %v1613_v29 }
 0x26d   :  { %v1884_v21 = vpop.f32.mrf.mxu0 }
 0x26e   :  { %v1576_v63 = vadd.f32 %v1883_v0, %v3080_v19  ;;  %v1615_v3 = vmax.f32 %v1573_v47, %v1599_v8 }
 0x26f   :  { %v1885_v50 = vpop.f32.mrf.mxu0 }
 0x270   :  { %v1886_v15 = vadd.f32 %v1885_v50, %v1884_v21  ;;  %v1600_v20 = vmul.f32 0.2, %v1576_v63 }
 0x271   :  { %v1887_v48 = vpop.f32.mrf.mxu0 }
 0x272   :  { %v1581_v61 = vadd.f32 %v1886_v15, %v3080_v19  ;;  %v1616_v39 = vmax.f32 %v1576_v63, %v1600_v20 }
 0x273   :  { %v1888_v53 = vpop.f32.mrf.mxu0 }
 0x274   :  { %v1889_v43 = vadd.f32 %v1888_v53, %v1887_v48  ;;  %v1601_v18 = vmul.f32 0.2, %v1581_v61  ;;  %v1626_v33 = vpack.c.bf16 %v1616_v39, %v1615_v3 }
 0x276   :  { %v1584_v62 = vadd.f32 %v1889_v43, %v3080_v19  ;;  %v1617_v5 = vmax.f32 %v1581_v61, %v1601_v18  ;;  %v1619_v19 = vld [vmem:[%s3128_s5] sm:$0xf]  ;;  %s2123_s5 = scalar_lea.vmem %s1696_s20, 16 }
 0x277   :  { %p2124_p0 = scmp.ne.s32.totalorder %s1696_s20, %s2123_s5  ;;  %p2129_p2 = scmp.lt.s32.totalorder %s2127_s21, %s2123_s5 }
 0x278   :  { %v1602_v35 = vmul.f32 0.2, %v1584_v62 }
 0x279   :  { %p2130_p3 = por %p2129_p2, %p2128_p1 }
 0x27a   :  { %v1618_v2 = vmax.f32 %v1584_v62, %v1602_v35 }
 0x27b   :  { %p2131_p4 = pnand %p2130_p3, %p2124_p0 }
 0x27c   :  { %v1627_v27 = vpack.c.bf16 %v1618_v2, %v1617_v5 }
 0x27e   :  { %1900 = vmatpush3.bf16.xpose.msra.mxu1 %v1627_v27 }
 0x27f   :  { %1901 = vmatprep.subr.bf16.mxu1 %v2146_v4 }
 0x286   :  { %1902 = vmatpush3.bf16.xpose.msra.mxu1 %v1626_v33 }
 0x287   :  { %1903 = vmatprep.subr.bf16.mxu1 %v2146_v4 }
 0x28e   :  { %1904 = vmatpush3.bf16.xpose.msra.mxu1 %v1625_v40 }
 0x28f   :  { %1905 = vmatprep.subr.bf16.mxu1 %v2146_v4 }
 0x296   :  { %1906 = vmatpush3.bf16.xpose.msra.mxu1 %v1624_v16 }
 0x297   :  { %1907 = vmatprep.subr.bf16.mxu1 %v2146_v4 }
 0x29e   :  { %1908 = vmatpush3.bf16.xpose.msra.mxu1 %v1623_v14 }
 0x29f   :  { %1909 = vmatprep.subr.bf16.mxu1 %v2146_v4 }
 0x2a6   :  { %1910 = vmatpush3.bf16.xpose.msra.mxu1 %v3094_v34 }
 0x2a7   :  { %1911 = vmatprep.subr.bf16.mxu1 %v2146_v4 }
 0x2ae   :  { %1912 = vmatpush3.bf16.xpose.msra.mxu1 %v3090_v28 }
 0x2af   :  { %1913 = vmatprep.subr.bf16.mxu1 %v2146_v4 }
 0x2b6   :  { %1914 = vmatpush3.bf16.xpose.msra.mxu1 %v3086_v11 }
 0x2bd   :  { %1916 = vmatmul.mubr.bf16.vlgmr.msra.gmra.mxu1 %v1619_v19 }
 0x37d   :  { %v1662_v22 = vpop.f32.mrf.mxu1 }
 0x37e   :  { %v1678_v25 = vadd.f32 %v1677_v46, %v1662_v22 }
 0x37f   :  { %v1917_v34 = vpop.f32.mrf.mxu1 }
 0x380   :  { %v1679_v55 = vand.u32 2147483647, %v1678_v25  ;;  %vm1685_vm2 = vcmp.ge.f32.partialorder %v1678_v25, 0.0 }
 0x381   :  { %v1665_v30 = vpop.f32.mrf.mxu1 }
 0x382   :  { %v1680_v23 = vsub.f32 0.0, %v1679_v55 }
 0x383   :  { %v1918_v28 = vpop.f32.mrf.mxu1 }
 0x384   :  { %v1681_v26 = vmul.f32 1.442695, %v1680_v23 }
 0x386   :  { %2119 = vpow2.f32 %v1681_v26 }
 0x393   :  { %v2120_v4 = vpop.eup %2119 }
 0x394   :  { %v1683_v11 = vadd.f32 1.0, %v2120_v4 }
 0x396   :  { %2121 = vrcp.f32 %v1683_v11 }
 0x3a3   :  { %v2122_v14 = vpop.eup %2121 }
 0x3a4   :  { %v1686_v36 = vmul.f32 %v2122_v14, %v2120_v4 }
 0x3a6   :  { %v1687_v54 = vsel %vm1685_vm2, %v2122_v14, %v1686_v36 }
 0x3a7   :  { %1688 = vst [vmem:[#allocation3] sm:$0x1] %v1687_v54 }
 0x3a8   :  { %2134 = shalt.err (!%p2131_p4)
}
 0x3a9   :  { %1698 = dma.vmem_to_hbm [thread:$0]  %s1696_s20, 16, %s3130_s7, [#allocation4]  }
 0x3aa   :  { %2143 = dma.done.wait [#allocation4], 16  }
 0x3ab   :  { %2144 = vsyncadd [#allocation4], 4294967280 }
 0x3ac   :  { %1702 = vsyncpa [#allocation4], 1 }

</bundles_post_ra>
